<compile_context>
chip_gen: v7x
topology: tpu7x:2x2x1
jax: 0.10.0
libtpu: 0.0.40
codegen_flags: <defaults>
</compile_context>

<pallas_src>
import functools

import jax
import jax.numpy as jnp
from jax import lax
from jax.experimental import pallas as pl
from jax.experimental.pallas import tpu as pltpu


# ----------------------------- Pallas kernel -------------------------------

def _lstm_kernel(x_ref, wih0_ref, whh0_ref, b0_ref, wih1_ref, whh1_ref,
                 b1_ref, w2_ref, b2_ref, y_ref, pre0_ref, h1s_ref,
                 *, seq, bp, hp):
    """Whole sequence in one kernel invocation (everything VMEM resident).

    x_ref:    (S*Bp, Ip)   f32   padded inputs, row t*Bp + b <-> (t, b)
    wih0_ref: (Ip, 4*Hp)   bf16  layer-0 input weights, gate-blocked [i,f,o,g]
    whh0_ref: (Hp, 4*Hp)   bf16  layer-0 recurrent weights
    b0_ref:   (1, 4*Hp)    f32   layer-0 fused bias (b_ih + b_hh)
    wih1_ref: (Hp, 4*Hp)   bf16  layer-1 input weights
    whh1_ref: (Hp, 4*Hp)   bf16  layer-1 recurrent weights
    b1_ref:   (1, 4*Hp)    f32   layer-1 fused bias
    w2_ref:   (Hp, Op)     bf16  linear head weight
    b2_ref:   (1, Op)      f32   linear head bias
    y_ref:    (S*Bp, Op)   f32   output
    pre0_ref: (S*Bp, 4*Hp) f32   scratch: hoisted layer-0 input projection
    h1s_ref:  (S*Bp, Hp)   f32   scratch: layer-1 hidden states, all steps
    """
    f32 = jnp.float32
    bf16 = jnp.bfloat16

    # Recurrent weights load once; they stay resident for the whole loop.
    whh0 = whh0_ref[...]
    wih1 = wih1_ref[...]
    whh1 = whh1_ref[...]
    # Hoisted bias broadcast (would be re-emitted every iteration otherwise).
    b1b = jnp.broadcast_to(b1_ref[...], (bp, 4 * hp))

    # Hoisted layer-0 input projection for ALL timesteps: one bulk matmul
    # with bias folded in; removes half of layer-0's in-loop MXU work.
    pre0_ref[...] = jnp.dot(x_ref[...].astype(bf16), wih0_ref[...],
                            preferred_element_type=f32) + b0_ref[...]

    def gate_math(gates, c_prev):
        # Packed gate order [i, f, o, g]: one sigmoid over 3*hp lanes + one
        # tanh over the last hp lanes (single EUP push for all sigmoid gates).
        ifo = jax.nn.sigmoid(gates[:, :3 * hp])
        g_g = jnp.tanh(gates[:, 3 * hp:])
        i_g = ifo[:, :hp]
        f_g = ifo[:, hp:2 * hp]
        o_g = ifo[:, 2 * hp:]
        c_new = f_g * c_prev + i_g * g_g
        h_new = o_g * jnp.tanh(c_new)
        return h_new, c_new

    def step(t, carry):
        h0, c0, h1, c1 = carry
        row = pl.multiple_of(t * bp, bp)
        # Layer 0: only the recurrent half stays on the serial chain.
        g0 = pre0_ref[pl.ds(row, bp), :] + jnp.dot(
            h0.astype(bf16), whh0, preferred_element_type=f32)
        h0, c0 = gate_math(g0, c0)
        # Layer 1: two independent small dots (no lane concat, no extra temp).
        g1 = (jnp.dot(h0.astype(bf16), wih1, preferred_element_type=f32)
              + jnp.dot(h1.astype(bf16), whh1, preferred_element_type=f32)
              + b1b)
        h1, c1 = gate_math(g1, c1)
        # Stash h1(t) for the batched linear head after the loop.
        h1s_ref[pl.ds(row, bp), :] = h1
        return h0, c0, h1, c1

    # Padded feature lanes stay exactly 0: zero weights/bias -> preactivation
    # 0 -> tanh gate is 0, and c starts at 0 so f*0 + i*0 = 0 forever.  Padded
    # batch rows compute independent garbage, sliced off by the wrapper.
    z = jnp.zeros((bp, hp), f32)
    unroll = True if seq <= 64 else 8
    lax.fori_loop(0, seq, step, (z, z, z, z), unroll=unroll)

    # Linear head hoisted out of the recurrence: one batched matmul over all
    # (timestep, batch) rows with a lane-dense (Op multiple of 128) store.
    y = jnp.dot(h1s_ref[...].astype(bf16), w2_ref[...],
                preferred_element_type=f32) + b2_ref[...]
    y_ref[...] = y.astype(y_ref.dtype)


# ------------------------------ JAX wrapper ---------------------------------

def _round_up(x, m):
    return -(-x // m) * m


# PyTorch packs LSTM gates as [i, f, g, o]; we re-block them as [i, f, o, g]
# so the three sigmoid gates are contiguous (single EUP push in the kernel).
_GATE_ORDER = (0, 1, 3, 2)


def _pack_gate_weight(w, in_real, in_pad, h_real, h_pad):
    """(4*h_real, in_real) PyTorch weight -> (in_pad, 4*h_pad) bf16, transposed
    and gate-blocked: packed gate k lives at columns [k*h_pad, k*h_pad+h_real)."""
    out = jnp.zeros((in_pad, 4 * h_pad), jnp.float32)
    for k, g in enumerate(_GATE_ORDER):
        blk = w[g * h_real:(g + 1) * h_real, :].astype(jnp.float32).T
        out = out.at[:in_real, k * h_pad:k * h_pad + h_real].set(blk)
    return out.astype(jnp.bfloat16)


def _pack_gate_bias(b, h_real, h_pad):
    out = jnp.zeros((1, 4 * h_pad), jnp.float32)
    for k, g in enumerate(_GATE_ORDER):
        out = out.at[0, k * h_pad:k * h_pad + h_real].set(
            b[g * h_real:(g + 1) * h_real].astype(jnp.float32))
    return out


def lstm_forward_pallas(x, params):
    """x: (S, B, I) float32 (seq-major, nn.LSTM batch_first=False).
    Returns (S, B, O) float32."""
    S, B, I = x.shape
    H = params["w_hh0"].shape[1]
    O = params["w2"].shape[0]

    Bp = max(8, _round_up(B, 8))        # sublane-aligned batch
    Hp = max(32, _round_up(H, 8))       # per-gate width -> 4*Hp >= 128 lanes
    Ip = max(8, _round_up(I, 8))
    Op = max(128, _round_up(O, 128))    # lane-dense output store

    f32 = jnp.float32
    bf16 = jnp.bfloat16

    # Padded input, flattened to (S*Bp, Ip) so layer-0's input projection is
    # one bulk matmul inside the kernel.
    xp = (jnp.zeros((S, Bp, Ip), f32).at[:, :B, :I].set(x.astype(f32))
          .reshape(S * Bp, Ip))

    # Gate-blocked, transposed, bf16 weights; fused f32 biases.
    wih0 = _pack_gate_weight(params["w_ih0"], I, Ip, H, Hp)   # (Ip, 4Hp)
    whh0 = _pack_gate_weight(params["w_hh0"], H, Hp, H, Hp)   # (Hp, 4Hp)
    b0 = _pack_gate_bias(params["b_ih0"] + params["b_hh0"], H, Hp)
    wih1 = _pack_gate_weight(params["w_ih1"], H, Hp, H, Hp)
    whh1 = _pack_gate_weight(params["w_hh1"], H, Hp, H, Hp)
    b1 = _pack_gate_bias(params["b_ih1"] + params["b_hh1"], H, Hp)

    # Linear head.
    w2 = jnp.zeros((Hp, Op), f32).at[:H, :O].set(
        params["w2"].astype(f32).T).astype(bf16)
    b2 = jnp.zeros((1, Op), f32).at[0, :O].set(params["b2"].astype(f32))

    kernel = functools.partial(_lstm_kernel, seq=S, bp=Bp, hp=Hp)

    full2d = lambda r, c: pl.BlockSpec((r, c), lambda i: (0, 0))

    y_pad = pl.pallas_call(
        kernel,
        out_shape=jax.ShapeDtypeStruct((S * Bp, Op), f32),
        grid=(1,),
        in_specs=[
            full2d(S * Bp, Ip),     # x (whole flattened sequence)
            full2d(Ip, 4 * Hp),     # W_ih layer 0
            full2d(Hp, 4 * Hp),     # W_hh layer 0
            full2d(1, 4 * Hp),      # fused bias layer 0
            full2d(Hp, 4 * Hp),     # W_ih layer 1
            full2d(Hp, 4 * Hp),     # W_hh layer 1
            full2d(1, 4 * Hp),      # fused bias layer 1
            full2d(Hp, Op),         # head weight
            full2d(1, Op),          # head bias
        ],
        out_specs=full2d(S * Bp, Op),
        scratch_shapes=[
            pltpu.VMEM((S * Bp, 4 * Hp), f32),   # hoisted layer-0 projection
            pltpu.VMEM((S * Bp, Hp), f32),       # h1 for all timesteps
        ],
        compiler_params=pltpu.CompilerParams(
            dimension_semantics=("arbitrary",)),  # serial recurrence
    )(xp, wih0, whh0, b0, wih1, whh1, b1, w2, b2)

    return y_pad.reshape(S, Bp, Op)[:, :B, :O]


# ------------------------- pure-JAX reference -------------------------------

def lstm_forward_ref(x, params):
    S, B, I = x.shape
    H = params["w_hh0"].shape[1]

    def cell(x_in, h, c, w_ih, w_hh, b_ih, b_hh):
        gates = x_in @ w_ih.T + b_ih + h @ w_hh.T + b_hh
        i, f, g, o = jnp.split(gates, 4, axis=-1)
        i, f, o = jax.nn.sigmoid(i), jax.nn.sigmoid(f), jax.nn.sigmoid(o)
        g = jnp.tanh(g)
        c_new = f * c + i * g
        return o * jnp.tanh(c_new), c_new

    def step(carry, x_t):
        h0, c0, h1, c1 = carry
        h0, c0 = cell(x_t, h0, c0, params["w_ih0"], params["w_hh0"],
                      params["b_ih0"], params["b_hh0"])
        h1, c1 = cell(h0, h1, c1, params["w_ih1"], params["w_hh1"],
                      params["b_ih1"], params["b_hh1"])
        return (h0, c0, h1, c1), h1

    z = jnp.zeros((B, H), jnp.float32)
    _, hs = jax.lax.scan(step, (z, z, z, z), x)             # (S, B, H)
    y = hs.reshape(S * B, H) @ params["w2"].T + params["b2"]
    return y.reshape(S, B, -1)


# --------------------------------- main --------------------------------------

if __name__ == "__main__":
    # Module defaults: input_size=2, hidden_size=4, output_size=1, num_layer=2
    I, H, O = 2, 4, 1
    S, B = 8, 2

    key = jax.random.PRNGKey(0)
    ks = jax.random.split(key, 12)
    u = lambda k, shape: jax.random.uniform(k, shape, jnp.float32, -0.5, 0.5)

    params = {
        "w_ih0": u(ks[0], (4 * H, I)), "w_hh0": u(ks[1], (4 * H, H)),
        "b_ih0": u(ks[2], (4 * H,)),   "b_hh0": u(ks[3], (4 * H,)),
        "w_ih1": u(ks[4], (4 * H, H)), "w_hh1": u(ks[5], (4 * H, H)),
        "b_ih1": u(ks[6], (4 * H,)),   "b_hh1": u(ks[7], (4 * H,)),
        "w2":    u(ks[8], (O, H)),     "b2":    u(ks[9], (O,)),
    }
    x = jax.random.normal(ks[10], (S, B, I), jnp.float32)

    y = jax.block_until_ready(lstm_forward_pallas(x, params))
    y_ref = jax.block_until_ready(lstm_forward_ref(x, params))

    assert y.shape == (S, B, O), y.shape
    err = float(jnp.max(jnp.abs(y - y_ref)))
    # Tolerance loosened vs the f32-operand version: matmul operands are now
    # bf16 (f32 accumulation / f32 state), and the rounding compounds through
    # the S-step recurrence vs the f32 reference (per review guidance).
    assert err < 3e-2, err
    print("KERNEL_OK")
</pallas_src>

<mosaic_0001>
module attributes {stable_mosaic.version = 11 : i64} {
  func.func @_lstm_kernel(%arg0: i32, %arg1: memref<64x8xf32, #tpu.memory_space<vmem>>, %arg2: memref<8x128xbf16, #tpu.memory_space<vmem>>, %arg3: memref<32x128xbf16, #tpu.memory_space<vmem>>, %arg4: memref<1x128xf32, #tpu.memory_space<vmem>>, %arg5: memref<32x128xbf16, #tpu.memory_space<vmem>>, %arg6: memref<32x128xbf16, #tpu.memory_space<vmem>>, %arg7: memref<1x128xf32, #tpu.memory_space<vmem>>, %arg8: memref<32x128xbf16, #tpu.memory_space<vmem>>, %arg9: memref<1x128xf32, #tpu.memory_space<vmem>>, %arg10: memref<64x128xf32, #tpu.memory_space<vmem>>, %arg11: memref<64x128xf32, #tpu.memory_space<vmem>>, %arg12: memref<64x32xf32, #tpu.memory_space<vmem>>) attributes {dimension_semantics = [#tpu.dimension_semantics<arbitrary>], iteration_bounds = array<i64: 1>, scalar_prefetch = 0 : i64, scratch_operands = 2 : i64, tpu.core_type = #tpu.core_type<tc>, window_params = [{pipeline_mode = #tpu.pipeline_mode<synchronous>, transform_indices = @transform_0, window_bounds = array<i64: 64, 8>}, {pipeline_mode = #tpu.pipeline_mode<synchronous>, transform_indices = @transform_1, window_bounds = array<i64: 8, 128>}, {pipeline_mode = #tpu.pipeline_mode<synchronous>, transform_indices = @transform_2, window_bounds = array<i64: 32, 128>}, {pipeline_mode = #tpu.pipeline_mode<synchronous>, transform_indices = @transform_3, window_bounds = array<i64: 1, 128>}, {pipeline_mode = #tpu.pipeline_mode<synchronous>, transform_indices = @transform_4, window_bounds = array<i64: 32, 128>}, {pipeline_mode = #tpu.pipeline_mode<synchronous>, transform_indices = @transform_5, window_bounds = array<i64: 32, 128>}, {pipeline_mode = #tpu.pipeline_mode<synchronous>, transform_indices = @transform_6, window_bounds = array<i64: 1, 128>}, {pipeline_mode = #tpu.pipeline_mode<synchronous>, transform_indices = @transform_7, window_bounds = array<i64: 32, 128>}, {pipeline_mode = #tpu.pipeline_mode<synchronous>, transform_indices = @transform_8, window_bounds = array<i64: 1, 128>}, {pipeline_mode = #tpu.pipeline_mode<synchronous>, transform_indices = @transform_9, window_bounds = array<i64: 64, 128>}]} {
    %c0 = arith.constant 0 : index
    %c0_0 = arith.constant 0 : index
    %0 = vector.load %arg3[%c0, %c0_0] : memref<32x128xbf16, #tpu.memory_space<vmem>>, vector<32x128xbf16>
    %c0_1 = arith.constant 0 : index
    %c0_2 = arith.constant 0 : index
    %1 = vector.load %arg5[%c0_1, %c0_2] : memref<32x128xbf16, #tpu.memory_space<vmem>>, vector<32x128xbf16>
    %c0_3 = arith.constant 0 : index
    %c0_4 = arith.constant 0 : index
    %2 = vector.load %arg6[%c0_3, %c0_4] : memref<32x128xbf16, #tpu.memory_space<vmem>>, vector<32x128xbf16>
    %c0_5 = arith.constant 0 : index
    %c0_6 = arith.constant 0 : index
    %3 = vector.load %arg7[%c0_5, %c0_6] : memref<1x128xf32, #tpu.memory_space<vmem>>, vector<1x128xf32>
    %4 = vector.shape_cast %3 : vector<1x128xf32> to vector<1x128xf32>
    %5 = vector.broadcast %4 : vector<1x128xf32> to vector<8x128xf32>
    %c0_7 = arith.constant 0 : index
    %c0_8 = arith.constant 0 : index
    %6 = vector.load %arg1[%c0_7, %c0_8] : memref<64x8xf32, #tpu.memory_space<vmem>>, vector<64x8xf32>
    %7 = arith.truncf %6 : vector<64x8xf32> to vector<64x8xbf16>
    %c0_9 = arith.constant 0 : index
    %c0_10 = arith.constant 0 : index
    %8 = vector.load %arg2[%c0_9, %c0_10] : memref<8x128xbf16, #tpu.memory_space<vmem>>, vector<8x128xbf16>
    %cst = arith.constant dense<0.000000e+00> : vector<64x128xf32>
    %9 = tpu.matmul %7, %8, %cst {dimension_numbers = #tpu.dot_dimension_numbers<[1], [0], [0], [1], [0, 0, 1, 1], [], []>} : vector<64x8xbf16>, vector<8x128xbf16>, vector<64x128xf32> -> vector<64x128xf32>
    %c0_11 = arith.constant 0 : index
    %c0_12 = arith.constant 0 : index
    %10 = vector.load %arg4[%c0_11, %c0_12] : memref<1x128xf32, #tpu.memory_space<vmem>>, vector<1x128xf32>
    %11 = vector.broadcast %10 : vector<1x128xf32> to vector<64x128xf32>
    %12 = arith.addf %9, %11 : vector<64x128xf32>
    %c0_13 = arith.constant 0 : index
    %c0_14 = arith.constant 0 : index
    %13 = vector.load %arg11[%c0_13, %c0_14] : memref<64x128xf32, #tpu.memory_space<vmem>>, vector<64x128xf32>
    tpu.vector_store %arg11[%c0_13, %c0_14], %12 {strides = array<i32>} : memref<64x128xf32, #tpu.memory_space<vmem>>, vector<64x128xf32>,
    %cst_15 = arith.constant 0.000000e+00 : f32
    %14 = vector.broadcast %cst_15 : f32 to vector<8x32xf32>
    %c0_i32 = arith.constant 0 : i32
    %c8_i32 = arith.constant 8 : i32
    %15 = arith.muli %c0_i32, %c8_i32 : i32
    %16 = tpu.assume_multiple %15, 8 : i32
    %17 = arith.index_cast %16 : i32 to index
    %c0_16 = arith.constant 0 : index
    %18 = vector.load %arg11[%17, %c0_16] : memref<64x128xf32, #tpu.memory_space<vmem>>, vector<8x128xf32>
    %19 = arith.truncf %14 : vector<8x32xf32> to vector<8x32xbf16>
    %cst_17 = arith.constant dense<0.000000e+00> : vector<8x128xf32>
    %20 = tpu.matmul %19, %0, %cst_17 {dimension_numbers = #tpu.dot_dimension_numbers<[1], [0], [0], [1], [0, 0, 1, 1], [], []>} : vector<8x32xbf16>, vector<32x128xbf16>, vector<8x128xf32> -> vector<8x128xf32>
    %21 = arith.addf %18, %20 : vector<8x128xf32>
    %22 = vector.extract_strided_slice %21 {offsets = [0, 0], sizes = [8, 96], strides = [1, 1]} : vector<8x128xf32> to vector<8x96xf32>
    %23 = arith.negf %22 : vector<8x96xf32>
    %24 = math.exp %23 : vector<8x96xf32>
    %cst_18 = arith.constant 1.000000e+00 : f32
    %25 = vector.broadcast %cst_18 : f32 to vector<8x96xf32>
    %26 = arith.addf %25, %24 : vector<8x96xf32>
    %27 = arith.divf %25, %26 : vector<8x96xf32>
    %28 = vector.extract_strided_slice %21 {offsets = [0, 96], sizes = [8, 32], strides = [1, 1]} : vector<8x128xf32> to vector<8x32xf32>
    %29 = math.tanh %28 : vector<8x32xf32>
    %30 = vector.extract_strided_slice %27 {offsets = [0, 0], sizes = [8, 32], strides = [1, 1]} : vector<8x96xf32> to vector<8x32xf32>
    %31 = vector.extract_strided_slice %27 {offsets = [0, 32], sizes = [8, 32], strides = [1, 1]} : vector<8x96xf32> to vector<8x32xf32>
    %32 = vector.extract_strided_slice %27 {offsets = [0, 64], sizes = [8, 32], strides = [1, 1]} : vector<8x96xf32> to vector<8x32xf32>
    %33 = arith.mulf %31, %14 : vector<8x32xf32>
    %34 = arith.mulf %30, %29 : vector<8x32xf32>
    %35 = arith.addf %33, %34 : vector<8x32xf32>
    %36 = math.tanh %35 : vector<8x32xf32>
    %37 = arith.mulf %32, %36 : vector<8x32xf32>
    %38 = arith.truncf %37 : vector<8x32xf32> to vector<8x32xbf16>
    %cst_19 = arith.constant dense<0.000000e+00> : vector<8x128xf32>
    %39 = tpu.matmul %38, %1, %cst_19 {dimension_numbers = #tpu.dot_dimension_numbers<[1], [0], [0], [1], [0, 0, 1, 1], [], []>} : vector<8x32xbf16>, vector<32x128xbf16>, vector<8x128xf32> -> vector<8x128xf32>
    %40 = arith.truncf %14 : vector<8x32xf32> to vector<8x32xbf16>
    %cst_20 = arith.constant dense<0.000000e+00> : vector<8x128xf32>
    %41 = tpu.matmul %40, %2, %cst_20 {dimension_numbers = #tpu.dot_dimension_numbers<[1], [0], [0], [1], [0, 0, 1, 1], [], []>} : vector<8x32xbf16>, vector<32x128xbf16>, vector<8x128xf32> -> vector<8x128xf32>
    %42 = arith.addf %39, %41 : vector<8x128xf32>
    %43 = arith.addf %42, %5 : vector<8x128xf32>
    %44 = vector.extract_strided_slice %43 {offsets = [0, 0], sizes = [8, 96], strides = [1, 1]} : vector<8x128xf32> to vector<8x96xf32>
    %45 = arith.negf %44 : vector<8x96xf32>
    %46 = math.exp %45 : vector<8x96xf32>
    %cst_21 = arith.constant 1.000000e+00 : f32
    %47 = vector.broadcast %cst_21 : f32 to vector<8x96xf32>
    %48 = arith.addf %47, %46 : vector<8x96xf32>
    %49 = arith.divf %47, %48 : vector<8x96xf32>
    %50 = vector.extract_strided_slice %43 {offsets = [0, 96], sizes = [8, 32], strides = [1, 1]} : vector<8x128xf32> to vector<8x32xf32>
    %51 = math.tanh %50 : vector<8x32xf32>
    %52 = vector.extract_strided_slice %49 {offsets = [0, 0], sizes = [8, 32], strides = [1, 1]} : vector<8x96xf32> to vector<8x32xf32>
    %53 = vector.extract_strided_slice %49 {offsets = [0, 32], sizes = [8, 32], strides = [1, 1]} : vector<8x96xf32> to vector<8x32xf32>
    %54 = vector.extract_strided_slice %49 {offsets = [0, 64], sizes = [8, 32], strides = [1, 1]} : vector<8x96xf32> to vector<8x32xf32>
    %55 = arith.mulf %53, %14 : vector<8x32xf32>
    %56 = arith.mulf %52, %51 : vector<8x32xf32>
    %57 = arith.addf %55, %56 : vector<8x32xf32>
    %58 = math.tanh %57 : vector<8x32xf32>
    %59 = arith.mulf %54, %58 : vector<8x32xf32>
    %60 = arith.index_cast %16 : i32 to index
    %c0_22 = arith.constant 0 : index
    %61 = vector.load %arg12[%60, %c0_22] : memref<64x32xf32, #tpu.memory_space<vmem>>, vector<8x32xf32>
    tpu.vector_store %arg12[%60, %c0_22], %59 {strides = array<i32>} : memref<64x32xf32, #tpu.memory_space<vmem>>, vector<8x32xf32>,
    %c1_i32 = arith.constant 1 : i32
    %c8_i32_23 = arith.constant 8 : i32
    %62 = arith.muli %c1_i32, %c8_i32_23 : i32
    %63 = tpu.assume_multiple %62, 8 : i32
    %64 = arith.index_cast %63 : i32 to index
    %c0_24 = arith.constant 0 : index
    %65 = vector.load %arg11[%64, %c0_24] : memref<64x128xf32, #tpu.memory_space<vmem>>, vector<8x128xf32>
    %66 = arith.truncf %37 : vector<8x32xf32> to vector<8x32xbf16>
    %cst_25 = arith.constant dense<0.000000e+00> : vector<8x128xf32>
    %67 = tpu.matmul %66, %0, %cst_25 {dimension_numbers = #tpu.dot_dimension_numbers<[1], [0], [0], [1], [0, 0, 1, 1], [], []>} : vector<8x32xbf16>, vector<32x128xbf16>, vector<8x128xf32> -> vector<8x128xf32>
    %68 = arith.addf %65, %67 : vector<8x128xf32>
    %69 = vector.extract_strided_slice %68 {offsets = [0, 0], sizes = [8, 96], strides = [1, 1]} : vector<8x128xf32> to vector<8x96xf32>
    %70 = arith.negf %69 : vector<8x96xf32>
    %71 = math.exp %70 : vector<8x96xf32>
    %cst_26 = arith.constant 1.000000e+00 : f32
    %72 = vector.broadcast %cst_26 : f32 to vector<8x96xf32>
    %73 = arith.addf %72, %71 : vector<8x96xf32>
    %74 = arith.divf %72, %73 : vector<8x96xf32>
    %75 = vector.extract_strided_slice %68 {offsets = [0, 96], sizes = [8, 32], strides = [1, 1]} : vector<8x128xf32> to vector<8x32xf32>
    %76 = math.tanh %75 : vector<8x32xf32>
    %77 = vector.extract_strided_slice %74 {offsets = [0, 0], sizes = [8, 32], strides = [1, 1]} : vector<8x96xf32> to vector<8x32xf32>
    %78 = vector.extract_strided_slice %74 {offsets = [0, 32], sizes = [8, 32], strides = [1, 1]} : vector<8x96xf32> to vector<8x32xf32>
    %79 = vector.extract_strided_slice %74 {offsets = [0, 64], sizes = [8, 32], strides = [1, 1]} : vector<8x96xf32> to vector<8x32xf32>
    %80 = arith.mulf %78, %35 : vector<8x32xf32>
    %81 = arith.mulf %77, %76 : vector<8x32xf32>
    %82 = arith.addf %80, %81 : vector<8x32xf32>
    %83 = math.tanh %82 : vector<8x32xf32>
    %84 = arith.mulf %79, %83 : vector<8x32xf32>
    %85 = arith.truncf %84 : vector<8x32xf32> to vector<8x32xbf16>
    %cst_27 = arith.constant dense<0.000000e+00> : vector<8x128xf32>
    %86 = tpu.matmul %85, %1, %cst_27 {dimension_numbers = #tpu.dot_dimension_numbers<[1], [0], [0], [1], [0, 0, 1, 1], [], []>} : vector<8x32xbf16>, vector<32x128xbf16>, vector<8x128xf32> -> vector<8x128xf32>
    %87 = arith.truncf %59 : vector<8x32xf32> to vector<8x32xbf16>
    %cst_28 = arith.constant dense<0.000000e+00> : vector<8x128xf32>
    %88 = tpu.matmul %87, %2, %cst_28 {dimension_numbers = #tpu.dot_dimension_numbers<[1], [0], [0], [1], [0, 0, 1, 1], [], []>} : vector<8x32xbf16>, vector<32x128xbf16>, vector<8x128xf32> -> vector<8x128xf32>
    %89 = arith.addf %86, %88 : vector<8x128xf32>
    %90 = arith.addf %89, %5 : vector<8x128xf32>
    %91 = vector.extract_strided_slice %90 {offsets = [0, 0], sizes = [8, 96], strides = [1, 1]} : vector<8x128xf32> to vector<8x96xf32>
    %92 = arith.negf %91 : vector<8x96xf32>
    %93 = math.exp %92 : vector<8x96xf32>
    %cst_29 = arith.constant 1.000000e+00 : f32
    %94 = vector.broadcast %cst_29 : f32 to vector<8x96xf32>
    %95 = arith.addf %94, %93 : vector<8x96xf32>
    %96 = arith.divf %94, %95 : vector<8x96xf32>
    %97 = vector.extract_strided_slice %90 {offsets = [0, 96], sizes = [8, 32], strides = [1, 1]} : vector<8x128xf32> to vector<8x32xf32>
    %98 = math.tanh %97 : vector<8x32xf32>
    %99 = vector.extract_strided_slice %96 {offsets = [0, 0], sizes = [8, 32], strides = [1, 1]} : vector<8x96xf32> to vector<8x32xf32>
    %100 = vector.extract_strided_slice %96 {offsets = [0, 32], sizes = [8, 32], strides = [1, 1]} : vector<8x96xf32> to vector<8x32xf32>
    %101 = vector.extract_strided_slice %96 {offsets = [0, 64], sizes = [8, 32], strides = [1, 1]} : vector<8x96xf32> to vector<8x32xf32>
    %102 = arith.mulf %100, %57 : vector<8x32xf32>
    %103 = arith.mulf %99, %98 : vector<8x32xf32>
    %104 = arith.addf %102, %103 : vector<8x32xf32>
    %105 = math.tanh %104 : vector<8x32xf32>
    %106 = arith.mulf %101, %105 : vector<8x32xf32>
    %107 = arith.index_cast %63 : i32 to index
    %c0_30 = arith.constant 0 : index
    %108 = vector.load %arg12[%107, %c0_30] : memref<64x32xf32, #tpu.memory_space<vmem>>, vector<8x32xf32>
    tpu.vector_store %arg12[%107, %c0_30], %106 {strides = array<i32>} : memref<64x32xf32, #tpu.memory_space<vmem>>, vector<8x32xf32>,
    %c2_i32 = arith.constant 2 : i32
    %c8_i32_31 = arith.constant 8 : i32
    %109 = arith.muli %c2_i32, %c8_i32_31 : i32
    %110 = tpu.assume_multiple %109, 8 : i32
    %111 = arith.index_cast %110 : i32 to index
    %c0_32 = arith.constant 0 : index
    %112 = vector.load %arg11[%111, %c0_32] : memref<64x128xf32, #tpu.memory_space<vmem>>, vector<8x128xf32>
    %113 = arith.truncf %84 : vector<8x32xf32> to vector<8x32xbf16>
    %cst_33 = arith.constant dense<0.000000e+00> : vector<8x128xf32>
    %114 = tpu.matmul %113, %0, %cst_33 {dimension_numbers = #tpu.dot_dimension_numbers<[1], [0], [0], [1], [0, 0, 1, 1], [], []>} : vector<8x32xbf16>, vector<32x128xbf16>, vector<8x128xf32> -> vector<8x128xf32>
    %115 = arith.addf %112, %114 : vector<8x128xf32>
    %116 = vector.extract_strided_slice %115 {offsets = [0, 0], sizes = [8, 96], strides = [1, 1]} : vector<8x128xf32> to vector<8x96xf32>
    %117 = arith.negf %116 : vector<8x96xf32>
    %118 = math.exp %117 : vector<8x96xf32>
    %cst_34 = arith.constant 1.000000e+00 : f32
    %119 = vector.broadcast %cst_34 : f32 to vector<8x96xf32>
    %120 = arith.addf %119, %118 : vector<8x96xf32>
    %121 = arith.divf %119, %120 : vector<8x96xf32>
    %122 = vector.extract_strided_slice %115 {offsets = [0, 96], sizes = [8, 32], strides = [1, 1]} : vector<8x128xf32> to vector<8x32xf32>
    %123 = math.tanh %122 : vector<8x32xf32>
    %124 = vector.extract_strided_slice %121 {offsets = [0, 0], sizes = [8, 32], strides = [1, 1]} : vector<8x96xf32> to vector<8x32xf32>
    %125 = vector.extract_strided_slice %121 {offsets = [0, 32], sizes = [8, 32], strides = [1, 1]} : vector<8x96xf32> to vector<8x32xf32>
    %126 = vector.extract_strided_slice %121 {offsets = [0, 64], sizes = [8, 32], strides = [1, 1]} : vector<8x96xf32> to vector<8x32xf32>
    %127 = arith.mulf %125, %82 : vector<8x32xf32>
    %128 = arith.mulf %124, %123 : vector<8x32xf32>
    %129 = arith.addf %127, %128 : vector<8x32xf32>
    %130 = math.tanh %129 : vector<8x32xf32>
    %131 = arith.mulf %126, %130 : vector<8x32xf32>
    %132 = arith.truncf %131 : vector<8x32xf32> to vector<8x32xbf16>
    %cst_35 = arith.constant dense<0.000000e+00> : vector<8x128xf32>
    %133 = tpu.matmul %132, %1, %cst_35 {dimension_numbers = #tpu.dot_dimension_numbers<[1], [0], [0], [1], [0, 0, 1, 1], [], []>} : vector<8x32xbf16>, vector<32x128xbf16>, vector<8x128xf32> -> vector<8x128xf32>
    %134 = arith.truncf %106 : vector<8x32xf32> to vector<8x32xbf16>
    %cst_36 = arith.constant dense<0.000000e+00> : vector<8x128xf32>
    %135 = tpu.matmul %134, %2, %cst_36 {dimension_numbers = #tpu.dot_dimension_numbers<[1], [0], [0], [1], [0, 0, 1, 1], [], []>} : vector<8x32xbf16>, vector<32x128xbf16>, vector<8x128xf32> -> vector<8x128xf32>
    %136 = arith.addf %133, %135 : vector<8x128xf32>
    %137 = arith.addf %136, %5 : vector<8x128xf32>
    %138 = vector.extract_strided_slice %137 {offsets = [0, 0], sizes = [8, 96], strides = [1, 1]} : vector<8x128xf32> to vector<8x96xf32>
    %139 = arith.negf %138 : vector<8x96xf32>
    %140 = math.exp %139 : vector<8x96xf32>
    %cst_37 = arith.constant 1.000000e+00 : f32
    %141 = vector.broadcast %cst_37 : f32 to vector<8x96xf32>
    %142 = arith.addf %141, %140 : vector<8x96xf32>
    %143 = arith.divf %141, %142 : vector<8x96xf32>
    %144 = vector.extract_strided_slice %137 {offsets = [0, 96], sizes = [8, 32], strides = [1, 1]} : vector<8x128xf32> to vector<8x32xf32>
    %145 = math.tanh %144 : vector<8x32xf32>
    %146 = vector.extract_strided_slice %143 {offsets = [0, 0], sizes = [8, 32], strides = [1, 1]} : vector<8x96xf32> to vector<8x32xf32>
    %147 = vector.extract_strided_slice %143 {offsets = [0, 32], sizes = [8, 32], strides = [1, 1]} : vector<8x96xf32> to vector<8x32xf32>
    %148 = vector.extract_strided_slice %143 {offsets = [0, 64], sizes = [8, 32], strides = [1, 1]} : vector<8x96xf32> to vector<8x32xf32>
    %149 = arith.mulf %147, %104 : vector<8x32xf32>
    %150 = arith.mulf %146, %145 : vector<8x32xf32>
    %151 = arith.addf %149, %150 : vector<8x32xf32>
    %152 = math.tanh %151 : vector<8x32xf32>
    %153 = arith.mulf %148, %152 : vector<8x32xf32>
    %154 = arith.index_cast %110 : i32 to index
    %c0_38 = arith.constant 0 : index
    %155 = vector.load %arg12[%154, %c0_38] : memref<64x32xf32, #tpu.memory_space<vmem>>, vector<8x32xf32>
    tpu.vector_store %arg12[%154, %c0_38], %153 {strides = array<i32>} : memref<64x32xf32, #tpu.memory_space<vmem>>, vector<8x32xf32>,
    %c3_i32 = arith.constant 3 : i32
    %c8_i32_39 = arith.constant 8 : i32
    %156 = arith.muli %c3_i32, %c8_i32_39 : i32
    %157 = tpu.assume_multiple %156, 8 : i32
    %158 = arith.index_cast %157 : i32 to index
    %c0_40 = arith.constant 0 : index
    %159 = vector.load %arg11[%158, %c0_40] : memref<64x128xf32, #tpu.memory_space<vmem>>, vector<8x128xf32>
    %160 = arith.truncf %131 : vector<8x32xf32> to vector<8x32xbf16>
    %cst_41 = arith.constant dense<0.000000e+00> : vector<8x128xf32>
    %161 = tpu.matmul %160, %0, %cst_41 {dimension_numbers = #tpu.dot_dimension_numbers<[1], [0], [0], [1], [0, 0, 1, 1], [], []>} : vector<8x32xbf16>, vector<32x128xbf16>, vector<8x128xf32> -> vector<8x128xf32>
    %162 = arith.addf %159, %161 : vector<8x128xf32>
    %163 = vector.extract_strided_slice %162 {offsets = [0, 0], sizes = [8, 96], strides = [1, 1]} : vector<8x128xf32> to vector<8x96xf32>
    %164 = arith.negf %163 : vector<8x96xf32>
    %165 = math.exp %164 : vector<8x96xf32>
    %cst_42 = arith.constant 1.000000e+00 : f32
    %166 = vector.broadcast %cst_42 : f32 to vector<8x96xf32>
    %167 = arith.addf %166, %165 : vector<8x96xf32>
    %168 = arith.divf %166, %167 : vector<8x96xf32>
    %169 = vector.extract_strided_slice %162 {offsets = [0, 96], sizes = [8, 32], strides = [1, 1]} : vector<8x128xf32> to vector<8x32xf32>
    %170 = math.tanh %169 : vector<8x32xf32>
    %171 = vector.extract_strided_slice %168 {offsets = [0, 0], sizes = [8, 32], strides = [1, 1]} : vector<8x96xf32> to vector<8x32xf32>
    %172 = vector.extract_strided_slice %168 {offsets = [0, 32], sizes = [8, 32], strides = [1, 1]} : vector<8x96xf32> to vector<8x32xf32>
    %173 = vector.extract_strided_slice %168 {offsets = [0, 64], sizes = [8, 32], strides = [1, 1]} : vector<8x96xf32> to vector<8x32xf32>
    %174 = arith.mulf %172, %129 : vector<8x32xf32>
    %175 = arith.mulf %171, %170 : vector<8x32xf32>
    %176 = arith.addf %174, %175 : vector<8x32xf32>
    %177 = math.tanh %176 : vector<8x32xf32>
    %178 = arith.mulf %173, %177 : vector<8x32xf32>
    %179 = arith.truncf %178 : vector<8x32xf32> to vector<8x32xbf16>
    %cst_43 = arith.constant dense<0.000000e+00> : vector<8x128xf32>
    %180 = tpu.matmul %179, %1, %cst_43 {dimension_numbers = #tpu.dot_dimension_numbers<[1], [0], [0], [1], [0, 0, 1, 1], [], []>} : vector<8x32xbf16>, vector<32x128xbf16>, vector<8x128xf32> -> vector<8x128xf32>
    %181 = arith.truncf %153 : vector<8x32xf32> to vector<8x32xbf16>
    %cst_44 = arith.constant dense<0.000000e+00> : vector<8x128xf32>
    %182 = tpu.matmul %181, %2, %cst_44 {dimension_numbers = #tpu.dot_dimension_numbers<[1], [0], [0], [1], [0, 0, 1, 1], [], []>} : vector<8x32xbf16>, vector<32x128xbf16>, vector<8x128xf32> -> vector<8x128xf32>
    %183 = arith.addf %180, %182 : vector<8x128xf32>
    %184 = arith.addf %183, %5 : vector<8x128xf32>
    %185 = vector.extract_strided_slice %184 {offsets = [0, 0], sizes = [8, 96], strides = [1, 1]} : vector<8x128xf32> to vector<8x96xf32>
    %186 = arith.negf %185 : vector<8x96xf32>
    %187 = math.exp %186 : vector<8x96xf32>
    %cst_45 = arith.constant 1.000000e+00 : f32
    %188 = vector.broadcast %cst_45 : f32 to vector<8x96xf32>
    %189 = arith.addf %188, %187 : vector<8x96xf32>
    %190 = arith.divf %188, %189 : vector<8x96xf32>
    %191 = vector.extract_strided_slice %184 {offsets = [0, 96], sizes = [8, 32], strides = [1, 1]} : vector<8x128xf32> to vector<8x32xf32>
    %192 = math.tanh %191 : vector<8x32xf32>
    %193 = vector.extract_strided_slice %190 {offsets = [0, 0], sizes = [8, 32], strides = [1, 1]} : vector<8x96xf32> to vector<8x32xf32>
    %194 = vector.extract_strided_slice %190 {offsets = [0, 32], sizes = [8, 32], strides = [1, 1]} : vector<8x96xf32> to vector<8x32xf32>
    %195 = vector.extract_strided_slice %190 {offsets = [0, 64], sizes = [8, 32], strides = [1, 1]} : vector<8x96xf32> to vector<8x32xf32>
    %196 = arith.mulf %194, %151 : vector<8x32xf32>
    %197 = arith.mulf %193, %192 : vector<8x32xf32>
    %198 = arith.addf %196, %197 : vector<8x32xf32>
    %199 = math.tanh %198 : vector<8x32xf32>
    %200 = arith.mulf %195, %199 : vector<8x32xf32>
    %201 = arith.index_cast %157 : i32 to index
    %c0_46 = arith.constant 0 : index
    %202 = vector.load %arg12[%201, %c0_46] : memref<64x32xf32, #tpu.memory_space<vmem>>, vector<8x32xf32>
    tpu.vector_store %arg12[%201, %c0_46], %200 {strides = array<i32>} : memref<64x32xf32, #tpu.memory_space<vmem>>, vector<8x32xf32>,
    %c4_i32 = arith.constant 4 : i32
    %c8_i32_47 = arith.constant 8 : i32
    %203 = arith.muli %c4_i32, %c8_i32_47 : i32
    %204 = tpu.assume_multiple %203, 8 : i32
    %205 = arith.index_cast %204 : i32 to index
    %c0_48 = arith.constant 0 : index
    %206 = vector.load %arg11[%205, %c0_48] : memref<64x128xf32, #tpu.memory_space<vmem>>, vector<8x128xf32>
    %207 = arith.truncf %178 : vector<8x32xf32> to vector<8x32xbf16>
    %cst_49 = arith.constant dense<0.000000e+00> : vector<8x128xf32>
    %208 = tpu.matmul %207, %0, %cst_49 {dimension_numbers = #tpu.dot_dimension_numbers<[1], [0], [0], [1], [0, 0, 1, 1], [], []>} : vector<8x32xbf16>, vector<32x128xbf16>, vector<8x128xf32> -> vector<8x128xf32>
    %209 = arith.addf %206, %208 : vector<8x128xf32>
    %210 = vector.extract_strided_slice %209 {offsets = [0, 0], sizes = [8, 96], strides = [1, 1]} : vector<8x128xf32> to vector<8x96xf32>
    %211 = arith.negf %210 : vector<8x96xf32>
    %212 = math.exp %211 : vector<8x96xf32>
    %cst_50 = arith.constant 1.000000e+00 : f32
    %213 = vector.broadcast %cst_50 : f32 to vector<8x96xf32>
    %214 = arith.addf %213, %212 : vector<8x96xf32>
    %215 = arith.divf %213, %214 : vector<8x96xf32>
    %216 = vector.extract_strided_slice %209 {offsets = [0, 96], sizes = [8, 32], strides = [1, 1]} : vector<8x128xf32> to vector<8x32xf32>
    %217 = math.tanh %216 : vector<8x32xf32>
    %218 = vector.extract_strided_slice %215 {offsets = [0, 0], sizes = [8, 32], strides = [1, 1]} : vector<8x96xf32> to vector<8x32xf32>
    %219 = vector.extract_strided_slice %215 {offsets = [0, 32], sizes = [8, 32], strides = [1, 1]} : vector<8x96xf32> to vector<8x32xf32>
    %220 = vector.extract_strided_slice %215 {offsets = [0, 64], sizes = [8, 32], strides = [1, 1]} : vector<8x96xf32> to vector<8x32xf32>
    %221 = arith.mulf %219, %176 : vector<8x32xf32>
    %222 = arith.mulf %218, %217 : vector<8x32xf32>
    %223 = arith.addf %221, %222 : vector<8x32xf32>
    %224 = math.tanh %223 : vector<8x32xf32>
    %225 = arith.mulf %220, %224 : vector<8x32xf32>
    %226 = arith.truncf %225 : vector<8x32xf32> to vector<8x32xbf16>
    %cst_51 = arith.constant dense<0.000000e+00> : vector<8x128xf32>
    %227 = tpu.matmul %226, %1, %cst_51 {dimension_numbers = #tpu.dot_dimension_numbers<[1], [0], [0], [1], [0, 0, 1, 1], [], []>} : vector<8x32xbf16>, vector<32x128xbf16>, vector<8x128xf32> -> vector<8x128xf32>
    %228 = arith.truncf %200 : vector<8x32xf32> to vector<8x32xbf16>
    %cst_52 = arith.constant dense<0.000000e+00> : vector<8x128xf32>
    %229 = tpu.matmul %228, %2, %cst_52 {dimension_numbers = #tpu.dot_dimension_numbers<[1], [0], [0], [1], [0, 0, 1, 1], [], []>} : vector<8x32xbf16>, vector<32x128xbf16>, vector<8x128xf32> -> vector<8x128xf32>
    %230 = arith.addf %227, %229 : vector<8x128xf32>
    %231 = arith.addf %230, %5 : vector<8x128xf32>
    %232 = vector.extract_strided_slice %231 {offsets = [0, 0], sizes = [8, 96], strides = [1, 1]} : vector<8x128xf32> to vector<8x96xf32>
    %233 = arith.negf %232 : vector<8x96xf32>
    %234 = math.exp %233 : vector<8x96xf32>
    %cst_53 = arith.constant 1.000000e+00 : f32
    %235 = vector.broadcast %cst_53 : f32 to vector<8x96xf32>
    %236 = arith.addf %235, %234 : vector<8x96xf32>
    %237 = arith.divf %235, %236 : vector<8x96xf32>
    %238 = vector.extract_strided_slice %231 {offsets = [0, 96], sizes = [8, 32], strides = [1, 1]} : vector<8x128xf32> to vector<8x32xf32>
    %239 = math.tanh %238 : vector<8x32xf32>
    %240 = vector.extract_strided_slice %237 {offsets = [0, 0], sizes = [8, 32], strides = [1, 1]} : vector<8x96xf32> to vector<8x32xf32>
    %241 = vector.extract_strided_slice %237 {offsets = [0, 32], sizes = [8, 32], strides = [1, 1]} : vector<8x96xf32> to vector<8x32xf32>
    %242 = vector.extract_strided_slice %237 {offsets = [0, 64], sizes = [8, 32], strides = [1, 1]} : vector<8x96xf32> to vector<8x32xf32>
    %243 = arith.mulf %241, %198 : vector<8x32xf32>
    %244 = arith.mulf %240, %239 : vector<8x32xf32>
    %245 = arith.addf %243, %244 : vector<8x32xf32>
    %246 = math.tanh %245 : vector<8x32xf32>
    %247 = arith.mulf %242, %246 : vector<8x32xf32>
    %248 = arith.index_cast %204 : i32 to index
    %c0_54 = arith.constant 0 : index
    %249 = vector.load %arg12[%248, %c0_54] : memref<64x32xf32, #tpu.memory_space<vmem>>, vector<8x32xf32>
    tpu.vector_store %arg12[%248, %c0_54], %247 {strides = array<i32>} : memref<64x32xf32, #tpu.memory_space<vmem>>, vector<8x32xf32>,
    %c5_i32 = arith.constant 5 : i32
    %c8_i32_55 = arith.constant 8 : i32
    %250 = arith.muli %c5_i32, %c8_i32_55 : i32
    %251 = tpu.assume_multiple %250, 8 : i32
    %252 = arith.index_cast %251 : i32 to index
    %c0_56 = arith.constant 0 : index
    %253 = vector.load %arg11[%252, %c0_56] : memref<64x128xf32, #tpu.memory_space<vmem>>, vector<8x128xf32>
    %254 = arith.truncf %225 : vector<8x32xf32> to vector<8x32xbf16>
    %cst_57 = arith.constant dense<0.000000e+00> : vector<8x128xf32>
    %255 = tpu.matmul %254, %0, %cst_57 {dimension_numbers = #tpu.dot_dimension_numbers<[1], [0], [0], [1], [0, 0, 1, 1], [], []>} : vector<8x32xbf16>, vector<32x128xbf16>, vector<8x128xf32> -> vector<8x128xf32>
    %256 = arith.addf %253, %255 : vector<8x128xf32>
    %257 = vector.extract_strided_slice %256 {offsets = [0, 0], sizes = [8, 96], strides = [1, 1]} : vector<8x128xf32> to vector<8x96xf32>
    %258 = arith.negf %257 : vector<8x96xf32>
    %259 = math.exp %258 : vector<8x96xf32>
    %cst_58 = arith.constant 1.000000e+00 : f32
    %260 = vector.broadcast %cst_58 : f32 to vector<8x96xf32>
    %261 = arith.addf %260, %259 : vector<8x96xf32>
    %262 = arith.divf %260, %261 : vector<8x96xf32>
    %263 = vector.extract_strided_slice %256 {offsets = [0, 96], sizes = [8, 32], strides = [1, 1]} : vector<8x128xf32> to vector<8x32xf32>
    %264 = math.tanh %263 : vector<8x32xf32>
    %265 = vector.extract_strided_slice %262 {offsets = [0, 0], sizes = [8, 32], strides = [1, 1]} : vector<8x96xf32> to vector<8x32xf32>
    %266 = vector.extract_strided_slice %262 {offsets = [0, 32], sizes = [8, 32], strides = [1, 1]} : vector<8x96xf32> to vector<8x32xf32>
    %267 = vector.extract_strided_slice %262 {offsets = [0, 64], sizes = [8, 32], strides = [1, 1]} : vector<8x96xf32> to vector<8x32xf32>
    %268 = arith.mulf %266, %223 : vector<8x32xf32>
    %269 = arith.mulf %265, %264 : vector<8x32xf32>
    %270 = arith.addf %268, %269 : vector<8x32xf32>
    %271 = math.tanh %270 : vector<8x32xf32>
    %272 = arith.mulf %267, %271 : vector<8x32xf32>
    %273 = arith.truncf %272 : vector<8x32xf32> to vector<8x32xbf16>
    %cst_59 = arith.constant dense<0.000000e+00> : vector<8x128xf32>
    %274 = tpu.matmul %273, %1, %cst_59 {dimension_numbers = #tpu.dot_dimension_numbers<[1], [0], [0], [1], [0, 0, 1, 1], [], []>} : vector<8x32xbf16>, vector<32x128xbf16>, vector<8x128xf32> -> vector<8x128xf32>
    %275 = arith.truncf %247 : vector<8x32xf32> to vector<8x32xbf16>
    %cst_60 = arith.constant dense<0.000000e+00> : vector<8x128xf32>
    %276 = tpu.matmul %275, %2, %cst_60 {dimension_numbers = #tpu.dot_dimension_numbers<[1], [0], [0], [1], [0, 0, 1, 1], [], []>} : vector<8x32xbf16>, vector<32x128xbf16>, vector<8x128xf32> -> vector<8x128xf32>
    %277 = arith.addf %274, %276 : vector<8x128xf32>
    %278 = arith.addf %277, %5 : vector<8x128xf32>
    %279 = vector.extract_strided_slice %278 {offsets = [0, 0], sizes = [8, 96], strides = [1, 1]} : vector<8x128xf32> to vector<8x96xf32>
    %280 = arith.negf %279 : vector<8x96xf32>
    %281 = math.exp %280 : vector<8x96xf32>
    %cst_61 = arith.constant 1.000000e+00 : f32
    %282 = vector.broadcast %cst_61 : f32 to vector<8x96xf32>
    %283 = arith.addf %282, %281 : vector<8x96xf32>
    %284 = arith.divf %282, %283 : vector<8x96xf32>
    %285 = vector.extract_strided_slice %278 {offsets = [0, 96], sizes = [8, 32], strides = [1, 1]} : vector<8x128xf32> to vector<8x32xf32>
    %286 = math.tanh %285 : vector<8x32xf32>
    %287 = vector.extract_strided_slice %284 {offsets = [0, 0], sizes = [8, 32], strides = [1, 1]} : vector<8x96xf32> to vector<8x32xf32>
    %288 = vector.extract_strided_slice %284 {offsets = [0, 32], sizes = [8, 32], strides = [1, 1]} : vector<8x96xf32> to vector<8x32xf32>
    %289 = vector.extract_strided_slice %284 {offsets = [0, 64], sizes = [8, 32], strides = [1, 1]} : vector<8x96xf32> to vector<8x32xf32>
    %290 = arith.mulf %288, %245 : vector<8x32xf32>
    %291 = arith.mulf %287, %286 : vector<8x32xf32>
    %292 = arith.addf %290, %291 : vector<8x32xf32>
    %293 = math.tanh %292 : vector<8x32xf32>
    %294 = arith.mulf %289, %293 : vector<8x32xf32>
    %295 = arith.index_cast %251 : i32 to index
    %c0_62 = arith.constant 0 : index
    %296 = vector.load %arg12[%295, %c0_62] : memref<64x32xf32, #tpu.memory_space<vmem>>, vector<8x32xf32>
    tpu.vector_store %arg12[%295, %c0_62], %294 {strides = array<i32>} : memref<64x32xf32, #tpu.memory_space<vmem>>, vector<8x32xf32>,
    %c6_i32 = arith.constant 6 : i32
    %c8_i32_63 = arith.constant 8 : i32
    %297 = arith.muli %c6_i32, %c8_i32_63 : i32
    %298 = tpu.assume_multiple %297, 8 : i32
    %299 = arith.index_cast %298 : i32 to index
    %c0_64 = arith.constant 0 : index
    %300 = vector.load %arg11[%299, %c0_64] : memref<64x128xf32, #tpu.memory_space<vmem>>, vector<8x128xf32>
    %301 = arith.truncf %272 : vector<8x32xf32> to vector<8x32xbf16>
    %cst_65 = arith.constant dense<0.000000e+00> : vector<8x128xf32>
    %302 = tpu.matmul %301, %0, %cst_65 {dimension_numbers = #tpu.dot_dimension_numbers<[1], [0], [0], [1], [0, 0, 1, 1], [], []>} : vector<8x32xbf16>, vector<32x128xbf16>, vector<8x128xf32> -> vector<8x128xf32>
    %303 = arith.addf %300, %302 : vector<8x128xf32>
    %304 = vector.extract_strided_slice %303 {offsets = [0, 0], sizes = [8, 96], strides = [1, 1]} : vector<8x128xf32> to vector<8x96xf32>
    %305 = arith.negf %304 : vector<8x96xf32>
    %306 = math.exp %305 : vector<8x96xf32>
    %cst_66 = arith.constant 1.000000e+00 : f32
    %307 = vector.broadcast %cst_66 : f32 to vector<8x96xf32>
    %308 = arith.addf %307, %306 : vector<8x96xf32>
    %309 = arith.divf %307, %308 : vector<8x96xf32>
    %310 = vector.extract_strided_slice %303 {offsets = [0, 96], sizes = [8, 32], strides = [1, 1]} : vector<8x128xf32> to vector<8x32xf32>
    %311 = math.tanh %310 : vector<8x32xf32>
    %312 = vector.extract_strided_slice %309 {offsets = [0, 0], sizes = [8, 32], strides = [1, 1]} : vector<8x96xf32> to vector<8x32xf32>
    %313 = vector.extract_strided_slice %309 {offsets = [0, 32], sizes = [8, 32], strides = [1, 1]} : vector<8x96xf32> to vector<8x32xf32>
    %314 = vector.extract_strided_slice %309 {offsets = [0, 64], sizes = [8, 32], strides = [1, 1]} : vector<8x96xf32> to vector<8x32xf32>
    %315 = arith.mulf %313, %270 : vector<8x32xf32>
    %316 = arith.mulf %312, %311 : vector<8x32xf32>
    %317 = arith.addf %315, %316 : vector<8x32xf32>
    %318 = math.tanh %317 : vector<8x32xf32>
    %319 = arith.mulf %314, %318 : vector<8x32xf32>
    %320 = arith.truncf %319 : vector<8x32xf32> to vector<8x32xbf16>
    %cst_67 = arith.constant dense<0.000000e+00> : vector<8x128xf32>
    %321 = tpu.matmul %320, %1, %cst_67 {dimension_numbers = #tpu.dot_dimension_numbers<[1], [0], [0], [1], [0, 0, 1, 1], [], []>} : vector<8x32xbf16>, vector<32x128xbf16>, vector<8x128xf32> -> vector<8x128xf32>
    %322 = arith.truncf %294 : vector<8x32xf32> to vector<8x32xbf16>
    %cst_68 = arith.constant dense<0.000000e+00> : vector<8x128xf32>
    %323 = tpu.matmul %322, %2, %cst_68 {dimension_numbers = #tpu.dot_dimension_numbers<[1], [0], [0], [1], [0, 0, 1, 1], [], []>} : vector<8x32xbf16>, vector<32x128xbf16>, vector<8x128xf32> -> vector<8x128xf32>
    %324 = arith.addf %321, %323 : vector<8x128xf32>
    %325 = arith.addf %324, %5 : vector<8x128xf32>
    %326 = vector.extract_strided_slice %325 {offsets = [0, 0], sizes = [8, 96], strides = [1, 1]} : vector<8x128xf32> to vector<8x96xf32>
    %327 = arith.negf %326 : vector<8x96xf32>
    %328 = math.exp %327 : vector<8x96xf32>
    %cst_69 = arith.constant 1.000000e+00 : f32
    %329 = vector.broadcast %cst_69 : f32 to vector<8x96xf32>
    %330 = arith.addf %329, %328 : vector<8x96xf32>
    %331 = arith.divf %329, %330 : vector<8x96xf32>
    %332 = vector.extract_strided_slice %325 {offsets = [0, 96], sizes = [8, 32], strides = [1, 1]} : vector<8x128xf32> to vector<8x32xf32>
    %333 = math.tanh %332 : vector<8x32xf32>
    %334 = vector.extract_strided_slice %331 {offsets = [0, 0], sizes = [8, 32], strides = [1, 1]} : vector<8x96xf32> to vector<8x32xf32>
    %335 = vector.extract_strided_slice %331 {offsets = [0, 32], sizes = [8, 32], strides = [1, 1]} : vector<8x96xf32> to vector<8x32xf32>
    %336 = vector.extract_strided_slice %331 {offsets = [0, 64], sizes = [8, 32], strides = [1, 1]} : vector<8x96xf32> to vector<8x32xf32>
    %337 = arith.mulf %335, %292 : vector<8x32xf32>
    %338 = arith.mulf %334, %333 : vector<8x32xf32>
    %339 = arith.addf %337, %338 : vector<8x32xf32>
    %340 = math.tanh %339 : vector<8x32xf32>
    %341 = arith.mulf %336, %340 : vector<8x32xf32>
    %342 = arith.index_cast %298 : i32 to index
    %c0_70 = arith.constant 0 : index
    %343 = vector.load %arg12[%342, %c0_70] : memref<64x32xf32, #tpu.memory_space<vmem>>, vector<8x32xf32>
    tpu.vector_store %arg12[%342, %c0_70], %341 {strides = array<i32>} : memref<64x32xf32, #tpu.memory_space<vmem>>, vector<8x32xf32>,
    %c7_i32 = arith.constant 7 : i32
    %c8_i32_71 = arith.constant 8 : i32
    %344 = arith.muli %c7_i32, %c8_i32_71 : i32
    %345 = tpu.assume_multiple %344, 8 : i32
    %346 = arith.index_cast %345 : i32 to index
    %c0_72 = arith.constant 0 : index
    %347 = vector.load %arg11[%346, %c0_72] : memref<64x128xf32, #tpu.memory_space<vmem>>, vector<8x128xf32>
    %348 = arith.truncf %319 : vector<8x32xf32> to vector<8x32xbf16>
    %cst_73 = arith.constant dense<0.000000e+00> : vector<8x128xf32>
    %349 = tpu.matmul %348, %0, %cst_73 {dimension_numbers = #tpu.dot_dimension_numbers<[1], [0], [0], [1], [0, 0, 1, 1], [], []>} : vector<8x32xbf16>, vector<32x128xbf16>, vector<8x128xf32> -> vector<8x128xf32>
    %350 = arith.addf %347, %349 : vector<8x128xf32>
    %351 = vector.extract_strided_slice %350 {offsets = [0, 0], sizes = [8, 96], strides = [1, 1]} : vector<8x128xf32> to vector<8x96xf32>
    %352 = arith.negf %351 : vector<8x96xf32>
    %353 = math.exp %352 : vector<8x96xf32>
    %cst_74 = arith.constant 1.000000e+00 : f32
    %354 = vector.broadcast %cst_74 : f32 to vector<8x96xf32>
    %355 = arith.addf %354, %353 : vector<8x96xf32>
    %356 = arith.divf %354, %355 : vector<8x96xf32>
    %357 = vector.extract_strided_slice %350 {offsets = [0, 96], sizes = [8, 32], strides = [1, 1]} : vector<8x128xf32> to vector<8x32xf32>
    %358 = math.tanh %357 : vector<8x32xf32>
    %359 = vector.extract_strided_slice %356 {offsets = [0, 0], sizes = [8, 32], strides = [1, 1]} : vector<8x96xf32> to vector<8x32xf32>
    %360 = vector.extract_strided_slice %356 {offsets = [0, 32], sizes = [8, 32], strides = [1, 1]} : vector<8x96xf32> to vector<8x32xf32>
    %361 = vector.extract_strided_slice %356 {offsets = [0, 64], sizes = [8, 32], strides = [1, 1]} : vector<8x96xf32> to vector<8x32xf32>
    %362 = arith.mulf %360, %317 : vector<8x32xf32>
    %363 = arith.mulf %359, %358 : vector<8x32xf32>
    %364 = arith.addf %362, %363 : vector<8x32xf32>
    %365 = math.tanh %364 : vector<8x32xf32>
    %366 = arith.mulf %361, %365 : vector<8x32xf32>
    %367 = arith.truncf %366 : vector<8x32xf32> to vector<8x32xbf16>
    %cst_75 = arith.constant dense<0.000000e+00> : vector<8x128xf32>
    %368 = tpu.matmul %367, %1, %cst_75 {dimension_numbers = #tpu.dot_dimension_numbers<[1], [0], [0], [1], [0, 0, 1, 1], [], []>} : vector<8x32xbf16>, vector<32x128xbf16>, vector<8x128xf32> -> vector<8x128xf32>
    %369 = arith.truncf %341 : vector<8x32xf32> to vector<8x32xbf16>
    %cst_76 = arith.constant dense<0.000000e+00> : vector<8x128xf32>
    %370 = tpu.matmul %369, %2, %cst_76 {dimension_numbers = #tpu.dot_dimension_numbers<[1], [0], [0], [1], [0, 0, 1, 1], [], []>} : vector<8x32xbf16>, vector<32x128xbf16>, vector<8x128xf32> -> vector<8x128xf32>
    %371 = arith.addf %368, %370 : vector<8x128xf32>
    %372 = arith.addf %371, %5 : vector<8x128xf32>
    %373 = vector.extract_strided_slice %372 {offsets = [0, 0], sizes = [8, 96], strides = [1, 1]} : vector<8x128xf32> to vector<8x96xf32>
    %374 = arith.negf %373 : vector<8x96xf32>
    %375 = math.exp %374 : vector<8x96xf32>
    %cst_77 = arith.constant 1.000000e+00 : f32
    %376 = vector.broadcast %cst_77 : f32 to vector<8x96xf32>
    %377 = arith.addf %376, %375 : vector<8x96xf32>
    %378 = arith.divf %376, %377 : vector<8x96xf32>
    %379 = vector.extract_strided_slice %372 {offsets = [0, 96], sizes = [8, 32], strides = [1, 1]} : vector<8x128xf32> to vector<8x32xf32>
    %380 = math.tanh %379 : vector<8x32xf32>
    %381 = vector.extract_strided_slice %378 {offsets = [0, 0], sizes = [8, 32], strides = [1, 1]} : vector<8x96xf32> to vector<8x32xf32>
    %382 = vector.extract_strided_slice %378 {offsets = [0, 32], sizes = [8, 32], strides = [1, 1]} : vector<8x96xf32> to vector<8x32xf32>
    %383 = vector.extract_strided_slice %378 {offsets = [0, 64], sizes = [8, 32], strides = [1, 1]} : vector<8x96xf32> to vector<8x32xf32>
    %384 = arith.mulf %382, %339 : vector<8x32xf32>
    %385 = arith.mulf %381, %380 : vector<8x32xf32>
    %386 = arith.addf %384, %385 : vector<8x32xf32>
    %387 = math.tanh %386 : vector<8x32xf32>
    %388 = arith.mulf %383, %387 : vector<8x32xf32>
    %389 = arith.index_cast %345 : i32 to index
    %c0_78 = arith.constant 0 : index
    %390 = vector.load %arg12[%389, %c0_78] : memref<64x32xf32, #tpu.memory_space<vmem>>, vector<8x32xf32>
    tpu.vector_store %arg12[%389, %c0_78], %388 {strides = array<i32>} : memref<64x32xf32, #tpu.memory_space<vmem>>, vector<8x32xf32>,
    %c8_i32_79 = arith.constant 8 : i32
    %c0_80 = arith.constant 0 : index
    %c0_81 = arith.constant 0 : index
    %391 = vector.load %arg12[%c0_80, %c0_81] : memref<64x32xf32, #tpu.memory_space<vmem>>, vector<64x32xf32>
    %392 = arith.truncf %391 : vector<64x32xf32> to vector<64x32xbf16>
    %c0_82 = arith.constant 0 : index
    %c0_83 = arith.constant 0 : index
    %393 = vector.load %arg8[%c0_82, %c0_83] : memref<32x128xbf16, #tpu.memory_space<vmem>>, vector<32x128xbf16>
    %cst_84 = arith.constant dense<0.000000e+00> : vector<64x128xf32>
    %394 = tpu.matmul %392, %393, %cst_84 {dimension_numbers = #tpu.dot_dimension_numbers<[1], [0], [0], [1], [0, 0, 1, 1], [], []>} : vector<64x32xbf16>, vector<32x128xbf16>, vector<64x128xf32> -> vector<64x128xf32>
    %c0_85 = arith.constant 0 : index
    %c0_86 = arith.constant 0 : index
    %395 = vector.load %arg9[%c0_85, %c0_86] : memref<1x128xf32, #tpu.memory_space<vmem>>, vector<1x128xf32>
    %396 = vector.broadcast %395 : vector<1x128xf32> to vector<64x128xf32>
    %397 = arith.addf %394, %396 : vector<64x128xf32>
    %c0_87 = arith.constant 0 : index
    %c0_88 = arith.constant 0 : index
    %398 = vector.load %arg10[%c0_87, %c0_88] : memref<64x128xf32, #tpu.memory_space<vmem>>, vector<64x128xf32>
    tpu.vector_store %arg10[%c0_87, %c0_88], %397 {strides = array<i32>} : memref<64x128xf32, #tpu.memory_space<vmem>>, vector<64x128xf32>,
    return
  }
  func.func @transform_0(%arg0: i32) -> (i32, i32) {
    %c0_i32 = arith.constant 0 : i32
    %c0_i32_0 = arith.constant 0 : i32
    %c0_i32_1 = arith.constant 0 : i32
    return %c0_i32, %c0_i32_0 : i32, i32
  }
  func.func @transform_1(%arg0: i32) -> (i32, i32) {
    %c0_i32 = arith.constant 0 : i32
    %c0_i32_0 = arith.constant 0 : i32
    %c0_i32_1 = arith.constant 0 : i32
    return %c0_i32, %c0_i32_0 : i32, i32
  }
  func.func @transform_2(%arg0: i32) -> (i32, i32) {
    %c0_i32 = arith.constant 0 : i32
    %c0_i32_0 = arith.constant 0 : i32
    %c0_i32_1 = arith.constant 0 : i32
    return %c0_i32, %c0_i32_0 : i32, i32
  }
  func.func @transform_3(%arg0: i32) -> (i32, i32) {
    %c0_i32 = arith.constant 0 : i32
    %c0_i32_0 = arith.constant 0 : i32
    %c0_i32_1 = arith.constant 0 : i32
    return %c0_i32, %c0_i32_0 : i32, i32
  }
  func.func @transform_4(%arg0: i32) -> (i32, i32) {
    %c0_i32 = arith.constant 0 : i32
    %c0_i32_0 = arith.constant 0 : i32
    %c0_i32_1 = arith.constant 0 : i32
    return %c0_i32, %c0_i32_0 : i32, i32
  }
  func.func @transform_5(%arg0: i32) -> (i32, i32) {
    %c0_i32 = arith.constant 0 : i32
    %c0_i32_0 = arith.constant 0 : i32
    %c0_i32_1 = arith.constant 0 : i32
    return %c0_i32, %c0_i32_0 : i32, i32
  }
  func.func @transform_6(%arg0: i32) -> (i32, i32) {
    %c0_i32 = arith.constant 0 : i32
    %c0_i32_0 = arith.constant 0 : i32
    %c0_i32_1 = arith.constant 0 : i32
    return %c0_i32, %c0_i32_0 : i32, i32
  }
  func.func @transform_7(%arg0: i32) -> (i32, i32) {
    %c0_i32 = arith.constant 0 : i32
    %c0_i32_0 = arith.constant 0 : i32
    %c0_i32_1 = arith.constant 0 : i32
    return %c0_i32, %c0_i32_0 : i32, i32
  }
  func.func @transform_8(%arg0: i32) -> (i32, i32) {
    %c0_i32 = arith.constant 0 : i32
    %c0_i32_0 = arith.constant 0 : i32
    %c0_i32_1 = arith.constant 0 : i32
    return %c0_i32, %c0_i32_0 : i32, i32
  }
  func.func @transform_9(%arg0: i32) -> (i32, i32) {
    %c0_i32 = arith.constant 0 : i32
    %c0_i32_0 = arith.constant 0 : i32
    %c0_i32_1 = arith.constant 0 : i32
    return %c0_i32, %c0_i32_0 : i32, i32
  }
}

</mosaic_0001>

<bundles_post_ra>
// kernel: tpu_custom_call.1
= control target key start
LH: loop header
LB: loop body
LE: loop exit
PB: predicated region body
PF: predicated region fallthrough
CT: control target
= control target key end

     0   :  { %vm86_vm0 = vcmask 1043456   ;;  %vm73_vm1 = vcmask 64512   ;;  %v2395_v10 = vmov 0.0   ;;  %vm2396_vm2 = vmmov 0   ;;  %s2909_s0 = inlined_call_operand.vmem [shape: f32[64,8], index: 0, kind: input, shape index: {}]   ;;  %s2910_s1 = inlined_call_operand.vmem [shape: bf16[8,128], index: 1, kind: input, shape index: {}]   ;;  %s2911_s2 = inlined_call_operand.vmem [shape: bf16[32,128], index: 2, kind: input, shape index: {}]   ;;  %s2912_s3 = inlined_call_operand.vmem [shape: f32[1,128], index: 3, kind: input, shape index: {}]   ;;  %s2913_s4 = inlined_call_operand.vmem [shape: bf16[32,128], index: 4, kind: input, shape index: {}]   ;;  %s2914_s5 = inlined_call_operand.vmem [shape: bf16[32,128], index: 5, kind: input, shape index: {}]   ;;  %s2915_s6 = inlined_call_operand.vmem [shape: f32[1,128], index: 6, kind: input, shape index: {}]   ;;  %s2916_s7 = inlined_call_operand.vmem [shape: bf16[32,128], index: 7, kind: input, shape index: {}]   ;;  %s2917_s8 = inlined_call_operand.vmem [shape: f32[1,128], index: 8, kind: input, shape index: {}]   ;;  %s2918_s9 = inlined_call_operand.hbm [shape: f32[64,128], index: 9, kind: output, shape index: {}]  }
   0x1   :  { %v65_v0 = vld [vmem:[%s2910_s1] sm:$0xf]  ;;  %v58_v2 = vld [vmem:[%s2909_s0 + $0x28] sm:$0xff]  ;;  %v59_v5 = vld [vmem:[%s2909_s0 + $0x30] sm:$0xff] }
   0x2   :  { %v57_v1 = vld [vmem:[%s2909_s0 + $0x20] sm:$0xff]  ;;  %2223 = vmatprep.subr.msk.bf16.mxu1 %vm86_vm0, %v65_v0  ;;  %v88_v3 = vsel %vm86_vm0, %v65_v0, 0  ;;  %2222 = vmatprep.subr.msk.bf16.mxu0 %vm86_vm0, %v65_v0  ;;  %v60_v6 = vld [vmem:[%s2909_s0 + $0x38] sm:$0xff]  ;;  %v54_v11 = vld [vmem:[%s2909_s0 + $0x8] sm:$0xff] }
   0x3   :  { %v63_v4 = vpack.c.bf16 %v58_v2, %v57_v1  ;;  %2221 = vmatpush3.bf16.msra.mxu1 %v88_v3  ;;  %2007 = vmatpush3.bf16.msra.mxu0 %v88_v3  ;;  %v64_v7 = vpack.c.bf16 %v60_v6, %v59_v5  ;;  %v2471_v8 = vld [vmem:[%s2911_s2] sm:$0xff]   ;;  %v55_v12 = vld [vmem:[%s2909_s0 + $0x10] sm:$0xff]  ;;  %v56_v13 = vld [vmem:[%s2909_s0 + $0x18] sm:$0xff] }
   0x4   :  { %v53_v9 = vld [vmem:[%s2909_s0] sm:$0xff]  ;;  %2016 = vmatprep.subr.bf16.mxu1 %v2395_v10  ;;  %v62_v15 = vpack.c.bf16 %v56_v13, %v55_v12  ;;  %2032 = vmatprep.subr.bf16.mxu0 %v2395_v10  ;;  %v2492_v16 = vld [vmem:[%s2911_s2 + $0x8] sm:$0xff]  }
   0x5   :  { %2012 = vmatprep.mubr.msk.bf16.mxu1 %vm73_vm1, %v63_v4  ;;  %v61_v14 = vpack.c.bf16 %v54_v11, %v53_v9 }
   0x6   :  { %2013 = vmatmul.mubr.msk.bf16.vlgmr.msra.gmra.mrb[0].mxu1 %vm73_vm1, %v64_v7 }
   0x7   :  { %2017 = vmatpush3.bf16.msra.mxu1 %v2471_v8  ;;  %2008 = vmatprep.mubr.msk.bf16.mxu0 %vm73_vm1, %v61_v14 }
   0x8   :  { %2009 = vmatmul.mubr.msk.bf16.vlgmr.msra.gmra.mrb[0].mxu0 %vm73_vm1, %v62_v15  ;;  %2018 = vmatprep.subr.bf16.mxu1 %v2395_v10 }
   0x9   :  { %2020 = vmatprep.mubr.msk.bf16.mxu1 %vm2396_vm2, %v2395_v10  ;;  %2036 = vmatprep.mubr.msk.bf16.mxu0 %vm2396_vm2, %v2395_v10 }
   0xa   :  { %14 = vsyncpa [#allocation5], 0  ;;  %v2397_v17 = vmov 0   ;;  %v1867_v18 = vld [vmem:[%s2912_s3] ss:$0 sm:$0xff]  ;;  %s2398_s3 = smov 32  }
   0xb   :  { %2019 = vmatpush3.bf16.msra.mxu1 %v2492_v16  ;;  %v2531_v50 = vld [vmem:[%s2914_s5] sm:$0xff]   ;;  %v2542_v52 = vld [vmem:[%s2914_s5 + $0x8] sm:$0xff]   ;;  %vm176_vm3 = vcmask 261120   ;;  %s2400_s27 = smov [#allocation4]  }
   0xc   :  { %2024 = vmatprep.subr.bf16.mxu1 %v2395_v10  ;;  %v2536_v51 = vld [vmem:[%s2913_s4] sm:$0xff]   ;;  %v2548_v53 = vld [vmem:[%s2913_s4 + $0x8] sm:$0xff]   ;;  %s2399_s4 = smov 64   ;;  %s1855_s28 = sshll.u32 %s2400_s27, 4  ;;  %s1856_s28 = int_to_ptr.vmem [resolvable:$true] %s1855_s28 }
   0xd   :  { %2033 = vmatpush3.bf16.msra.mxu0 %v2536_v51  ;;  %v2581_v63 = vld [vmem:[%s2915_s6] ss:$0 sm:$0xff]  ;;  %p2376_p1 = scmp.lt.s32.totalorder %s1856_s28, %s1856_s28 }
   0xe   :  { %2021 = vmatmul.mubr.bf16.vlgmr.msra.gmra.mrb[4].mxu1 %v2397_v17  ;;  %2034 = vmatprep.subr.bf16.mxu0 %v2395_v10 }
   0xf   :  { %2028 = vmatprep.mubr.msk.bf16.mxu1 %vm2396_vm2, %v2395_v10  ;;  %2025 = vmatpush3.bf16.msra.mxu1 %v2531_v50 }
  0x10   :  { %2026 = vmatprep.subr.bf16.mxu1 %v2395_v10 }
  0x11   :  { %2035 = vmatpush3.bf16.msra.mxu0 %v2548_v53 }
  0x12   :  { %2048 = vmatprep.subr.bf16.mxu0 %v2395_v10 }
  0x13   :  { %2027 = vmatpush3.bf16.msra.mxu1 %v2542_v52 }
  0x14   :  { %2040 = vmatprep.subr.bf16.mxu1 %v2395_v10 }
  0x16   :  { %2029 = vmatmul.mubr.bf16.vlgmr.msra.gmra.mrb[8].mxu1 %v2397_v17 }
  0x17   :  { %2041 = vmatpush3.bf16.msra.mxu1 %v2471_v8  ;;  %2044 = vmatprep.mubr.msk.bf16.mxu1 %vm2396_vm2, %v2395_v10 }
  0x18   :  { %2042 = vmatprep.subr.bf16.mxu1 %v2395_v10 }
  0x1b   :  { %2043 = vmatpush3.bf16.msra.mxu1 %v2492_v16 }
  0x1c   :  { %2056 = vmatprep.subr.bf16.mxu1 %v2395_v10 }
  0xd9   :  { %v2014_v19 = vpop.f32.mrb[0].mxu1 }
  0xda   :  { %v2509_v20 = vadd.f32 %v2014_v19, %v1867_v18  ;;  %v140_v21 = vpop.f32.mrb[1].mxu1 }
  0xdb   :  { %v2511_v22 = vadd.f32 %v1867_v18, %v140_v21  ;;  %v2015_v23 = vpop.f32.mrb[2].mxu1  ;;  %v2010_v24 = vpop.f32.mrb[0].mxu0 }
  0xdc   :  { %v2513_v25 = vadd.f32 %v2015_v23, %v1867_v18  ;;  %v2515_v26 = vadd.f32 %v2010_v24, %v1867_v18  ;;  %v143_v27 = vpop.f32.mrb[3].mxu1  ;;  %v124_v28 = vpop.f32.mrb[1].mxu0 }
  0xdd   :  { %v2517_v29 = vadd.f32 %v1867_v18, %v143_v27  ;;  %v2011_v30 = vpop.f32.mrb[2].mxu0  ;;  %v125_v31 = vadd.f32 %v1867_v18, %v124_v28 }
  0xde   :  { %v2519_v32 = vadd.f32 %v2011_v30, %v1867_v18  ;;  %v127_v33 = vpop.f32.mrb[3].mxu0 }
  0xdf   :  { %v2521_v34 = vadd.f32 %v1867_v18, %v127_v33 }
  0xe1   :  { %v214_v35 = vpop.f32.mrb[4].mxu1 }
  0xe2   :  { %v220_v36 = vadd.f32 %v214_v35, %v125_v31  ;;  %v2022_v37 = vpop.f32.mrb[5].mxu1 }
  0xe3   :  { %v217_v38 = vpop.f32.mrb[6].mxu1 }
  0xe4   :  { %2240 = vtanh.f32 %v220_v36  ;;  %v2023_v39 = vpop.f32.mrb[7].mxu1  ;;  %v1874_v41 = vmul.f32 -1.442695, %v220_v36 }
  0xe6   :  { %2242 = vpow2.f32 %v1874_v41 }
  0xe9   :  { %v292_v58 = vpop.f32.mrb[8].mxu1 }
  0xea   :  { %v2030_v59 = vpop.f32.mrb[9].mxu1 }
  0xeb   :  { %v295_v60 = vpop.f32.mrb[10].mxu1 }
  0xec   :  { %v2031_v61 = vpop.f32.mrb[11].mxu1 }
  0xee   :  { %v2241_v40 = vpop.eup %2240 }
  0xef   :  { %230 = vrot.lane.b32.xlu0 %v2241_v40, %s2398_s3 }
  0xf0   :  { %v2243_v42 = vpop.eup %2242 }
  0xf1   :  { %v224_v43 = vadd.f32 1.0, %v2243_v42 }
  0xf3   :  { %2244 = vrcp.f32 %v224_v43 }
  0xfd   :  { %v2245_v44 = vpop.eup %2244 }
  0xfe   :  { %v228_v47 = vmul.f32 0.0, %v2245_v44 }
 0x161   :  { %v231_v45 = vpop.permute.xlu0 %230 }
 0x162   :  { %v233_v46 = vmul.f32 %v2245_v44, %v231_v45 }
 0x164   :  { %235 = vrot.lane.b32.xlu0 %v233_v46, %s2398_s3 }
 0x1d6   :  { %v236_v48 = vpop.permute.xlu0 %235 }
 0x1d7   :  { %v2525_v49 = vadd.f32 %v236_v48, %v228_v47 }
 0x1d9   :  { %2246 = vtanh.f32 %v2525_v49 }
 0x1e3   :  { %v2247_v54 = vpop.eup %2246 }
 0x1e4   :  { %241 = vrot.lane.b32.xlu1 %v2247_v54, %s2398_s3 }
 0x256   :  { %v242_v55 = vpop.permute.xlu1 %241 }
 0x257   :  { %v244_v56 = vmul.f32 %v2245_v44, %v242_v55 }
 0x259   :  { %v245_v57 = vpack.c.bf16 %v244_v56, %v244_v56 }
 0x25b   :  { %299 = vrot.lane.b32.xlu1 %v245_v57, %s2399_s4 }
 0x2cd   :  { %v300_v62 = vpop.permute.xlu1 %299 }
 0x2ce   :  { %2037 = vmatmul.mubr.msk.bf16.vlgmr.msra.gmra.mrb[4].mxu0 %vm176_vm3, %v300_v62  ;;  %2045 = vmatmul.mubr.msk.bf16.vlgmr.msra.gmra.mrb[12].mxu1 %vm176_vm3, %v300_v62 }
 0x2cf   :  { %2057 = vmatpush3.bf16.msra.mxu1 %v2536_v51  ;;  %2049 = vmatpush3.bf16.msra.mxu0 %v2531_v50 }
 0x2d0   :  { %2058 = vmatprep.subr.bf16.mxu1 %v2395_v10  ;;  %2050 = vmatprep.subr.bf16.mxu0 %v2395_v10 }
 0x2d1   :  { %2060 = vmatprep.mubr.msk.bf16.mxu1 %vm2396_vm2, %v2395_v10  ;;  %2052 = vmatprep.mubr.msk.bf16.mxu0 %vm2396_vm2, %v2395_v10 }
 0x2d3   :  { %2059 = vmatpush3.bf16.msra.mxu1 %v2548_v53  ;;  %2051 = vmatpush3.bf16.msra.mxu0 %v2542_v52 }
 0x2d4   :  { %2064 = vmatprep.subr.bf16.mxu0 %v2395_v10  ;;  %2072 = vmatprep.subr.bf16.mxu1 %v2395_v10 }
 0x3a1   :  { %v350_v0 = vpop.f32.mrb[4].mxu0  ;;  %v422_v1 = vpop.f32.mrb[12].mxu1 }
 0x3a2   :  { %v351_v2 = vadd.f32 %v350_v0, %v292_v58  ;;  %v428_v3 = vadd.f32 %v422_v1, %v2521_v34  ;;  %v2038_v4 = vpop.f32.mrb[5].mxu0  ;;  %v2046_v5 = vpop.f32.mrb[13].mxu1 }
 0x3a3   :  { %v353_v6 = vpop.f32.mrb[6].mxu0  ;;  %v425_v7 = vpop.f32.mrb[14].mxu1 }
 0x3a4   :  { %v356_v9 = vadd.f32 %v2581_v63, %v351_v2  ;;  %2248 = vtanh.f32 %v428_v3  ;;  %v2039_v11 = vpop.f32.mrb[7].mxu0  ;;  %v2047_v12 = vpop.f32.mrb[15].mxu1  ;;  %v1882_v15 = vmul.f32 -1.442695, %v428_v3 }
 0x3a6   :  { %2250 = vtanh.f32 %v356_v9  ;;  %v1880_v17 = vmul.f32 -1.442695, %v356_v9 }
 0x3a7   :  { %2252 = vpow2.f32 %v1882_v15 }
 0x3a8   :  { %2254 = vpow2.f32 %v1880_v17 }
 0x3ae   :  { %v2249_v13 = vpop.eup %2248 }
 0x3af   :  { %438 = vrot.lane.b32.xlu1 %v2249_v13, %s2398_s3 }
 0x3b0   :  { %v2251_v14 = vpop.eup %2250 }
 0x3b1   :  { %366 = vrot.lane.b32.xlu0 %v2251_v14, %s2398_s3  ;;  %v2253_v18 = vpop.eup %2252 }
 0x3b2   :  { %v2255_v19 = vpop.eup %2254  ;;  %v432_v21 = vadd.f32 1.0, %v2253_v18 }
 0x3b3   :  { %v360_v23 = vadd.f32 1.0, %v2255_v19 }
 0x3b4   :  { %2256 = vrcp.f32 %v432_v21 }
 0x3b5   :  { %2258 = vrcp.f32 %v360_v23 }
 0x3be   :  { %v2257_v24 = vpop.eup %2256 }
 0x3bf   :  { %v2259_v30 = vpop.eup %2258  ;;  %v436_v34 = vmul.f32 %v2257_v24, %v2525_v49 }
 0x3c0   :  { %v364_v37 = vmul.f32 0.0, %v2259_v30 }
 0x421   :  { %v439_v27 = vpop.permute.xlu1 %438 }
 0x422   :  { %v441_v28 = vmul.f32 %v2257_v24, %v439_v27 }
 0x423   :  { %v367_v31 = vpop.permute.xlu0 %366 }
 0x424   :  { %v369_v33 = vmul.f32 %v2259_v30, %v367_v31  ;;  %443 = vrot.lane.b32.xlu1 %v441_v28, %s2398_s3 }
 0x426   :  { %371 = vrot.lane.b32.xlu0 %v369_v33, %s2398_s3 }
 0x496   :  { %v444_v35 = vpop.permute.xlu1 %443 }
 0x497   :  { %v2590_v36 = vadd.f32 %v444_v35, %v436_v34 }
 0x498   :  { %v372_v38 = vpop.permute.xlu0 %371 }
 0x499   :  { %2260 = vtanh.f32 %v2590_v36  ;;  %v2593_v39 = vadd.f32 %v372_v38, %v364_v37 }
 0x49b   :  { %2262 = vtanh.f32 %v2593_v39 }
 0x4a3   :  { %v2261_v40 = vpop.eup %2260 }
 0x4a4   :  { %449 = vrot.lane.b32.xlu1 %v2261_v40, %s2398_s3 }
 0x4a5   :  { %v2263_v41 = vpop.eup %2262 }
 0x4a6   :  { %377 = vrot.lane.b32.xlu0 %v2263_v41, %s2398_s3 }
 0x516   :  { %v450_v42 = vpop.permute.xlu1 %449 }
 0x517   :  { %v452_v43 = vmul.f32 %v2257_v24, %v450_v42 }
 0x518   :  { %v378_v44 = vpop.permute.xlu0 %377 }
 0x519   :  { %v453_v45 = vpack.c.bf16 %v452_v43, %v452_v43  ;;  %v2598_v46 = vmul.f32 %v2259_v30, %v378_v44 }
 0x51b   :  { %v454_v47 = vpack.c.bf16 %v2598_v46, %v2598_v46  ;;  %502 = vrot.lane.b32.xlu1 %v453_v45, %s2399_s4 }
 0x51d   :  { %456 = vrot.lane.b32.xlu0 %v454_v47, %s2399_s4 }
 0x58d   :  { %v503_v48 = vpop.permute.xlu1 %502 }
 0x58e   :  { %2061 = vmatmul.mubr.msk.bf16.vlgmr.msra.gmra.mrb[16].mxu1 %vm176_vm3, %v503_v48 }
 0x58f   :  { %v457_v49 = vpop.permute.xlu0 %456  ;;  %2073 = vmatpush3.bf16.msra.mxu1 %v2531_v50  ;;  %2076 = vmatprep.mubr.msk.bf16.mxu1 %vm2396_vm2, %v2395_v10 }
 0x590   :  { %2053 = vmatmul.mubr.msk.bf16.vlgmr.msra.gmra.mrb[8].mxu0 %vm176_vm3, %v457_v49  ;;  %2074 = vmatprep.subr.bf16.mxu1 %v2395_v10 }
 0x591   :  { %2065 = vmatpush3.bf16.msra.mxu0 %v2471_v8  ;;  %2068 = vmatprep.mubr.msk.bf16.mxu0 %vm2396_vm2, %v2395_v10 }
 0x592   :  { %2066 = vmatprep.subr.bf16.mxu0 %v2395_v10 }
 0x593   :  { %2075 = vmatpush3.bf16.msra.mxu1 %v2542_v52 }
 0x594   :  { %2088 = vmatprep.subr.bf16.mxu1 %v2395_v10 }
 0x595   :  { %2067 = vmatpush3.bf16.msra.mxu0 %v2492_v16 }
 0x596   :  { %2080 = vmatprep.subr.bf16.mxu0 %v2395_v10 }
 0x598   :  { %2069 = vmatmul.mubr.msk.bf16.vlgmr.msra.gmra.mrb[12].mxu0 %vm176_vm3, %v503_v48 }
 0x599   :  { %2081 = vmatpush3.bf16.msra.mxu0 %v2536_v51  ;;  %2084 = vmatprep.mubr.msk.bf16.mxu0 %vm2396_vm2, %v2395_v10 }
 0x59a   :  { %2082 = vmatprep.subr.bf16.mxu0 %v2395_v10 }
 0x59d   :  { %2083 = vmatpush3.bf16.msra.mxu0 %v2548_v53 }
 0x59e   :  { %2096 = vmatprep.subr.bf16.mxu0 %v2395_v10 }
 0x661   :  { %v541_v54 = vpop.f32.mrb[16].mxu1 }
 0x662   :  { %v2062_v55 = vpop.f32.mrb[17].mxu1 }
 0x663   :  { %v495_v56 = vpop.f32.mrb[8].mxu0  ;;  %v544_v57 = vpop.f32.mrb[18].mxu1 }
 0x664   :  { %v542_v58 = vadd.f32 %v541_v54, %v495_v56  ;;  %v2054_v59 = vpop.f32.mrb[9].mxu0  ;;  %v2063_v60 = vpop.f32.mrb[19].mxu1 }
 0x665   :  { %v498_v61 = vpop.f32.mrb[10].mxu0 }
 0x666   :  { %v547_v62 = vadd.f32 %v2581_v63, %v542_v58  ;;  %v2055_v0 = vpop.f32.mrb[11].mxu0 }
 0x668   :  { %2264 = vtanh.f32 %v547_v62  ;;  %v1885_v9 = vmul.f32 -1.442695, %v547_v62 }
 0x66b   :  { %v614_v1 = vpop.f32.mrb[12].mxu0 }
 0x66c   :  { %v620_v2 = vadd.f32 %v614_v1, %v2515_v26  ;;  %v2070_v3 = vpop.f32.mrb[13].mxu0 }
 0x66d   :  { %v617_v4 = vpop.f32.mrb[14].mxu0 }
 0x66e   :  { %2266 = vtanh.f32 %v620_v2  ;;  %v2071_v5 = vpop.f32.mrb[15].mxu0  ;;  %v1887_v11 = vmul.f32 -1.442695, %v620_v2 }
 0x66f   :  { %2268 = vpow2.f32 %v1885_v9 }
 0x670   :  { %2270 = vpow2.f32 %v1887_v11 }
 0x672   :  { %v2265_v6 = vpop.eup %2264 }
 0x673   :  { %557 = vrot.lane.b32.xlu0 %v2265_v6, %s2398_s3 }
 0x678   :  { %v2267_v7 = vpop.eup %2266 }
 0x679   :  { %630 = vrot.lane.b32.xlu1 %v2267_v7, %s2398_s3  ;;  %v2269_v12 = vpop.eup %2268 }
 0x67a   :  { %v551_v13 = vadd.f32 1.0, %v2269_v12  ;;  %v2271_v14 = vpop.eup %2270 }
 0x67b   :  { %v624_v15 = vadd.f32 1.0, %v2271_v14 }
 0x67c   :  { %2272 = vrcp.f32 %v551_v13 }
 0x67d   :  { %2274 = vrcp.f32 %v624_v15 }
 0x686   :  { %v2273_v26 = vpop.eup %2272 }
 0x687   :  { %v2275_v19 = vpop.eup %2274  ;;  %v555_v24 = vmul.f32 %v2273_v26, %v2593_v39 }
 0x688   :  { %v628_v30 = vmul.f32 %v2275_v19, %v2590_v36 }
 0x6e5   :  { %v558_v17 = vpop.permute.xlu0 %557 }
 0x6e6   :  { %v560_v18 = vmul.f32 %v2273_v26, %v558_v17 }
 0x6e8   :  { %562 = vrot.lane.b32.xlu0 %v560_v18, %s2398_s3 }
 0x6eb   :  { %v631_v21 = vpop.permute.xlu1 %630 }
 0x6ec   :  { %v633_v23 = vmul.f32 %v2275_v19, %v631_v21 }
 0x6ee   :  { %635 = vrot.lane.b32.xlu1 %v633_v23, %s2398_s3 }
 0x75a   :  { %v563_v27 = vpop.permute.xlu0 %562 }
 0x75b   :  { %v2632_v28 = vadd.f32 %v563_v27, %v555_v24 }
 0x75d   :  { %2276 = vtanh.f32 %v2632_v28 }
 0x760   :  { %v636_v31 = vpop.permute.xlu1 %635 }
 0x761   :  { %v2636_v33 = vadd.f32 %v636_v31, %v628_v30 }
 0x763   :  { %2278 = vtanh.f32 %v2636_v33 }
 0x767   :  { %v2277_v34 = vpop.eup %2276 }
 0x768   :  { %568 = vrot.lane.b32.xlu0 %v2277_v34, %s2398_s3 }
 0x76d   :  { %v2279_v35 = vpop.eup %2278 }
 0x76e   :  { %641 = vrot.lane.b32.xlu1 %v2279_v35, %s2398_s3 }
 0x7da   :  { %v569_v37 = vpop.permute.xlu0 %568 }
 0x7db   :  { %v2641_v38 = vmul.f32 %v2273_v26, %v569_v37 }
 0x7dd   :  { %v646_v39 = vpack.c.bf16 %v2641_v38, %v2641_v38 }
 0x7df   :  { %648 = vrot.lane.b32.xlu0 %v646_v39, %s2399_s4 }
 0x7e0   :  { %v642_v36 = vpop.permute.xlu1 %641 }
 0x7e1   :  { %v644_v40 = vmul.f32 %v2275_v19, %v642_v36 }
 0x7e3   :  { %v645_v41 = vpack.c.bf16 %v644_v40, %v644_v40 }
 0x7e5   :  { %694 = vrot.lane.b32.xlu1 %v645_v41, %s2399_s4 }
 0x851   :  { %v649_v42 = vpop.permute.xlu0 %648 }
 0x852   :  { %2077 = vmatmul.mubr.msk.bf16.vlgmr.msra.gmra.mrb[20].mxu1 %vm176_vm3, %v649_v42 }
 0x853   :  { %2089 = vmatpush3.bf16.msra.mxu1 %v2471_v8  ;;  %2092 = vmatprep.mubr.msk.bf16.mxu1 %vm2396_vm2, %v2395_v10 }
 0x854   :  { %2090 = vmatprep.subr.bf16.mxu1 %v2395_v10 }
 0x857   :  { %v695_v43 = vpop.permute.xlu1 %694  ;;  %2091 = vmatpush3.bf16.msra.mxu1 %v2492_v16 }
 0x858   :  { %2085 = vmatmul.mubr.msk.bf16.vlgmr.msra.gmra.mrb[16].mxu0 %vm176_vm3, %v695_v43  ;;  %2104 = vmatprep.subr.bf16.mxu1 %v2395_v10 }
 0x859   :  { %2097 = vmatpush3.bf16.msra.mxu0 %v2531_v50  ;;  %2100 = vmatprep.mubr.msk.bf16.mxu0 %vm2396_vm2, %v2395_v10 }
 0x85a   :  { %2093 = vmatmul.mubr.msk.bf16.vlgmr.msra.gmra.mrb[24].mxu1 %vm176_vm3, %v695_v43  ;;  %2098 = vmatprep.subr.bf16.mxu0 %v2395_v10 }
 0x85b   :  { %2105 = vmatpush3.bf16.msra.mxu1 %v2536_v51  ;;  %2108 = vmatprep.mubr.msk.bf16.mxu1 %vm2396_vm2, %v2395_v10 }
 0x85c   :  { %2106 = vmatprep.subr.bf16.mxu1 %v2395_v10 }
 0x85d   :  { %2099 = vmatpush3.bf16.msra.mxu0 %v2542_v52 }
 0x85e   :  { %2112 = vmatprep.subr.bf16.mxu0 %v2395_v10 }
 0x85f   :  { %2107 = vmatpush3.bf16.msra.mxu1 %v2548_v53 }
 0x860   :  { %2120 = vmatprep.subr.bf16.mxu1 %v2395_v10 }
 0x925   :  { %v687_v44 = vpop.f32.mrb[20].mxu1 }
 0x926   :  { %v2078_v45 = vpop.f32.mrb[21].mxu1 }
 0x927   :  { %v690_v47 = vpop.f32.mrb[22].mxu1 }
 0x928   :  { %v2079_v48 = vpop.f32.mrb[23].mxu1 }
 0x92b   :  { %v733_v49 = vpop.f32.mrb[16].mxu0 }
 0x92c   :  { %v734_v54 = vadd.f32 %v733_v49, %v687_v44  ;;  %v2086_v55 = vpop.f32.mrb[17].mxu0 }
 0x92d   :  { %v736_v56 = vpop.f32.mrb[18].mxu0  ;;  %v806_v57 = vpop.f32.mrb[24].mxu1 }
 0x92e   :  { %v739_v58 = vadd.f32 %v2581_v63, %v734_v54  ;;  %v812_v59 = vadd.f32 %v806_v57, %v2519_v32  ;;  %v2087_v60 = vpop.f32.mrb[19].mxu0  ;;  %v2094_v61 = vpop.f32.mrb[25].mxu1 }
 0x92f   :  { %v809_v62 = vpop.f32.mrb[26].mxu1 }
 0x930   :  { %2280 = vtanh.f32 %v739_v58  ;;  %v2095_v0 = vpop.f32.mrb[27].mxu1  ;;  %v1890_v3 = vmul.f32 -1.442695, %v739_v58  ;;  %v1892_v4 = vmul.f32 -1.442695, %v812_v59 }
 0x931   :  { %2282 = vtanh.f32 %v812_v59 }
 0x932   :  { %2284 = vpow2.f32 %v1890_v3 }
 0x933   :  { %2286 = vpow2.f32 %v1892_v4 }
 0x93a   :  { %v2281_v1 = vpop.eup %2280 }
 0x93b   :  { %v2283_v2 = vpop.eup %2282  ;;  %749 = vrot.lane.b32.xlu0 %v2281_v1, %s2398_s3 }
 0x93c   :  { %822 = vrot.lane.b32.xlu1 %v2283_v2, %s2398_s3  ;;  %v2285_v5 = vpop.eup %2284 }
 0x93d   :  { %v2287_v6 = vpop.eup %2286  ;;  %v743_v7 = vadd.f32 1.0, %v2285_v5 }
 0x93e   :  { %v816_v32 = vadd.f32 1.0, %v2287_v6 }
 0x93f   :  { %2288 = vrcp.f32 %v743_v7 }
 0x940   :  { %2290 = vrcp.f32 %v816_v32 }
 0x949   :  { %v2289_v9 = vpop.eup %2288 }
 0x94a   :  { %v2291_v12 = vpop.eup %2290  ;;  %v747_v26 = vmul.f32 %v2289_v9, %v2632_v28 }
 0x94b   :  { %v820_v18 = vmul.f32 %v2291_v12, %v2636_v33 }
 0x9ad   :  { %v750_v11 = vpop.permute.xlu0 %749 }
 0x9ae   :  { %v752_v13 = vmul.f32 %v2289_v9, %v750_v11  ;;  %v823_v14 = vpop.permute.xlu1 %822 }
 0x9af   :  { %v825_v15 = vmul.f32 %v2291_v12, %v823_v14 }
 0x9b0   :  { %754 = vrot.lane.b32.xlu0 %v752_v13, %s2398_s3 }
 0x9b1   :  { %827 = vrot.lane.b32.xlu1 %v825_v15, %s2398_s3 }
 0xa22   :  { %v755_v17 = vpop.permute.xlu0 %754 }
 0xa23   :  { %v2676_v19 = vadd.f32 %v755_v17, %v747_v26  ;;  %v828_v21 = vpop.permute.xlu1 %827 }
 0xa24   :  { %v2678_v23 = vadd.f32 %v828_v21, %v820_v18 }
 0xa25   :  { %2292 = vtanh.f32 %v2676_v19 }
 0xa26   :  { %2294 = vtanh.f32 %v2678_v23 }
 0xa2f   :  { %v2293_v24 = vpop.eup %2292 }
 0xa30   :  { %v2295_v27 = vpop.eup %2294  ;;  %760 = vrot.lane.b32.xlu0 %v2293_v24, %s2398_s3 }
 0xa31   :  { %833 = vrot.lane.b32.xlu1 %v2295_v27, %s2398_s3 }
 0xaa2   :  { %v761_v30 = vpop.permute.xlu0 %760 }
 0xaa3   :  { %v2684_v28 = vmul.f32 %v2289_v9, %v761_v30  ;;  %v834_v31 = vpop.permute.xlu1 %833 }
 0xaa4   :  { %v836_v33 = vmul.f32 %v2291_v12, %v834_v31 }
 0xaa5   :  { %v838_v34 = vpack.c.bf16 %v2684_v28, %v2684_v28 }
 0xaa6   :  { %v837_v35 = vpack.c.bf16 %v836_v33, %v836_v33 }
 0xaa7   :  { %840 = vrot.lane.b32.xlu0 %v838_v34, %s2399_s4 }
 0xaa8   :  { %886 = vrot.lane.b32.xlu1 %v837_v35, %s2399_s4 }
 0xb19   :  { %v841_v37 = vpop.permute.xlu0 %840 }
 0xb1a   :  { %v887_v39 = vpop.permute.xlu1 %886  ;;  %2101 = vmatmul.mubr.msk.bf16.vlgmr.msra.gmra.mrb[20].mxu0 %vm176_vm3, %v841_v37 }
 0xb1b   :  { %2109 = vmatmul.mubr.msk.bf16.vlgmr.msra.gmra.mrb[28].mxu1 %vm176_vm3, %v887_v39  ;;  %2113 = vmatpush3.bf16.msra.mxu0 %v2471_v8 }
 0xb1c   :  { %2114 = vmatprep.subr.bf16.mxu0 %v2395_v10  ;;  %2116 = vmatprep.mubr.msk.bf16.mxu0 %vm2396_vm2, %v2395_v10 }
 0xb1d   :  { %2121 = vmatpush3.bf16.msra.mxu1 %v2531_v50  ;;  %2124 = vmatprep.mubr.msk.bf16.mxu1 %vm2396_vm2, %v2395_v10 }
 0xb1e   :  { %2122 = vmatprep.subr.bf16.mxu1 %v2395_v10 }
 0xb1f   :  { %2115 = vmatpush3.bf16.msra.mxu0 %v2492_v16 }
 0xb20   :  { %2128 = vmatprep.subr.bf16.mxu0 %v2395_v10 }
 0xb21   :  { %2123 = vmatpush3.bf16.msra.mxu1 %v2542_v52 }
 0xb22   :  { %2117 = vmatmul.mubr.msk.bf16.vlgmr.msra.gmra.mrb[24].mxu0 %vm176_vm3, %v887_v39  ;;  %2136 = vmatprep.subr.bf16.mxu1 %v2395_v10 }
 0xb23   :  { %2129 = vmatpush3.bf16.msra.mxu0 %v2536_v51  ;;  %2132 = vmatprep.mubr.msk.bf16.mxu0 %vm2396_vm2, %v2395_v10 }
 0xb24   :  { %2130 = vmatprep.subr.bf16.mxu0 %v2395_v10 }
 0xb27   :  { %2131 = vmatpush3.bf16.msra.mxu0 %v2548_v53 }
 0xb28   :  { %2144 = vmatprep.subr.bf16.mxu0 %v2395_v10 }
 0xbed   :  { %v879_v36 = vpop.f32.mrb[20].mxu0 }
 0xbee   :  { %v925_v40 = vpop.f32.mrb[28].mxu1  ;;  %v2102_v41 = vpop.f32.mrb[21].mxu0 }
 0xbef   :  { %v926_v42 = vadd.f32 %v925_v40, %v879_v36  ;;  %v2110_v43 = vpop.f32.mrb[29].mxu1  ;;  %v882_v44 = vpop.f32.mrb[22].mxu0 }
 0xbf0   :  { %v928_v45 = vpop.f32.mrb[30].mxu1  ;;  %v2103_v47 = vpop.f32.mrb[23].mxu0 }
 0xbf1   :  { %v931_v48 = vadd.f32 %v2581_v63, %v926_v42  ;;  %v2111_v49 = vpop.f32.mrb[31].mxu1 }
 0xbf3   :  { %2296 = vtanh.f32 %v931_v48  ;;  %v1895_v61 = vmul.f32 -1.442695, %v931_v48 }
 0xbf5   :  { %v998_v54 = vpop.f32.mrb[24].mxu0 }
 0xbf6   :  { %v1004_v55 = vadd.f32 %v998_v54, %v2511_v22  ;;  %v2118_v56 = vpop.f32.mrb[25].mxu0 }
 0xbf7   :  { %v1001_v57 = vpop.f32.mrb[26].mxu0 }
 0xbf8   :  { %2298 = vtanh.f32 %v1004_v55  ;;  %v2119_v58 = vpop.f32.mrb[27].mxu0  ;;  %v1897_v62 = vmul.f32 -1.442695, %v1004_v55 }
 0xbf9   :  { %2300 = vpow2.f32 %v1895_v61 }
 0xbfa   :  { %2302 = vpow2.f32 %v1897_v62 }
 0xbfd   :  { %v2297_v59 = vpop.eup %2296 }
 0xbfe   :  { %941 = vrot.lane.b32.xlu0 %v2297_v59, %s2398_s3 }
 0xc02   :  { %v2299_v60 = vpop.eup %2298 }
 0xc03   :  { %1014 = vrot.lane.b32.xlu1 %v2299_v60, %s2398_s3  ;;  %v2301_v0 = vpop.eup %2300 }
 0xc04   :  { %v935_v1 = vadd.f32 1.0, %v2301_v0  ;;  %v2303_v2 = vpop.eup %2302 }
 0xc05   :  { %v1008_v3 = vadd.f32 1.0, %v2303_v2 }
 0xc06   :  { %2304 = vrcp.f32 %v935_v1 }
 0xc07   :  { %2306 = vrcp.f32 %v1008_v3 }
 0xc10   :  { %v2305_v22 = vpop.eup %2304 }
 0xc11   :  { %v2307_v6 = vpop.eup %2306  ;;  %v939_v9 = vmul.f32 %v2305_v22, %v2676_v19 }
 0xc12   :  { %v1012_v13 = vmul.f32 %v2307_v6, %v2678_v23 }
 0xc70   :  { %v942_v4 = vpop.permute.xlu0 %941 }
 0xc71   :  { %v944_v5 = vmul.f32 %v2305_v22, %v942_v4 }
 0xc73   :  { %946 = vrot.lane.b32.xlu0 %v944_v5, %s2398_s3 }
 0xc75   :  { %v1015_v7 = vpop.permute.xlu1 %1014 }
 0xc76   :  { %v1017_v32 = vmul.f32 %v2307_v6, %v1015_v7 }
 0xc78   :  { %1019 = vrot.lane.b32.xlu1 %v1017_v32, %s2398_s3 }
 0xce5   :  { %v947_v11 = vpop.permute.xlu0 %946 }
 0xce6   :  { %v2718_v12 = vadd.f32 %v947_v11, %v939_v9 }
 0xce8   :  { %2308 = vtanh.f32 %v2718_v12 }
 0xcea   :  { %v1020_v14 = vpop.permute.xlu1 %1019 }
 0xceb   :  { %v2722_v15 = vadd.f32 %v1020_v14, %v1012_v13 }
 0xced   :  { %2310 = vtanh.f32 %v2722_v15 }
 0xcf2   :  { %v2309_v26 = vpop.eup %2308 }
 0xcf3   :  { %952 = vrot.lane.b32.xlu0 %v2309_v26, %s2398_s3 }
 0xcf7   :  { %v2311_v17 = vpop.eup %2310 }
 0xcf8   :  { %1025 = vrot.lane.b32.xlu1 %v2311_v17, %s2398_s3 }
 0xd65   :  { %v953_v18 = vpop.permute.xlu0 %952 }
 0xd66   :  { %v2727_v19 = vmul.f32 %v2305_v22, %v953_v18 }
 0xd68   :  { %v1030_v21 = vpack.c.bf16 %v2727_v19, %v2727_v19 }
 0xd6a   :  { %1032 = vrot.lane.b32.xlu0 %v1030_v21, %s2399_s4  ;;  %v1026_v23 = vpop.permute.xlu1 %1025 }
 0xd6b   :  { %v1028_v24 = vmul.f32 %v2307_v6, %v1026_v23 }
 0xd6d   :  { %v1029_v27 = vpack.c.bf16 %v1028_v24, %v1028_v24 }
 0xd6f   :  { %1078 = vrot.lane.b32.xlu1 %v1029_v27, %s2399_s4 }
 0xddc   :  { %v1033_v30 = vpop.permute.xlu0 %1032 }
 0xddd   :  { %2125 = vmatmul.mubr.msk.bf16.vlgmr.msra.gmra.mrb[32].mxu1 %vm176_vm3, %v1033_v30 }
 0xdde   :  { %2137 = vmatpush3.bf16.msra.mxu1 %v2471_v8  ;;  %2140 = vmatprep.mubr.msk.bf16.mxu1 %vm2396_vm2, %v2395_v10 }
 0xddf   :  { %2138 = vmatprep.subr.bf16.mxu1 %v2395_v10 }
 0xde1   :  { %v1079_v31 = vpop.permute.xlu1 %1078 }
 0xde2   :  { %2139 = vmatpush3.bf16.msra.mxu1 %v2492_v16  ;;  %2133 = vmatmul.mubr.msk.bf16.vlgmr.msra.gmra.mrb[28].mxu0 %vm176_vm3, %v1079_v31 }
 0xde3   :  { %2152 = vmatprep.subr.bf16.mxu1 %v2395_v10  ;;  %2145 = vmatpush3.bf16.msra.mxu0 %v2531_v50 }
 0xde4   :  { %2146 = vmatprep.subr.bf16.mxu0 %v2395_v10  ;;  %2148 = vmatprep.mubr.msk.bf16.mxu0 %vm2396_vm2, %v2395_v10 }
 0xde5   :  { %2141 = vmatmul.mubr.msk.bf16.vlgmr.msra.gmra.mrb[36].mxu1 %vm176_vm3, %v1079_v31 }
 0xde6   :  { %2153 = vmatpush3.bf16.msra.mxu1 %v2536_v51  ;;  %2156 = vmatprep.mubr.msk.bf16.mxu1 %vm2396_vm2, %v2395_v10 }
 0xde7   :  { %2154 = vmatprep.subr.bf16.mxu1 %v2395_v10  ;;  %2147 = vmatpush3.bf16.msra.mxu0 %v2542_v52 }
 0xde8   :  { %2160 = vmatprep.subr.bf16.mxu0 %v2395_v10 }
 0xdea   :  { %2155 = vmatpush3.bf16.msra.mxu1 %v2548_v53 }
 0xdeb   :  { %2168 = vmatprep.subr.bf16.mxu1 %v2395_v10 }
 0xeb0   :  { %v1071_v33 = vpop.f32.mrb[32].mxu1 }
 0xeb1   :  { %v2126_v34 = vpop.f32.mrb[33].mxu1 }
 0xeb2   :  { %v1074_v35 = vpop.f32.mrb[34].mxu1 }
 0xeb3   :  { %v2127_v37 = vpop.f32.mrb[35].mxu1 }
 0xeb5   :  { %v1117_v39 = vpop.f32.mrb[28].mxu0 }
 0xeb6   :  { %v1118_v36 = vadd.f32 %v1117_v39, %v1071_v33  ;;  %v2134_v40 = vpop.f32.mrb[29].mxu0 }
 0xeb7   :  { %v1120_v41 = vpop.f32.mrb[30].mxu0 }
 0xeb8   :  { %v1123_v42 = vadd.f32 %v2581_v63, %v1118_v36  ;;  %v1190_v43 = vpop.f32.mrb[36].mxu1  ;;  %v2135_v44 = vpop.f32.mrb[31].mxu0 }
 0xeb9   :  { %v1196_v45 = vadd.f32 %v1190_v43, %v2517_v29  ;;  %v2142_v47 = vpop.f32.mrb[37].mxu1 }
 0xeba   :  { %2312 = vtanh.f32 %v1123_v42  ;;  %v1193_v48 = vpop.f32.mrb[38].mxu1  ;;  %v1900_v56 = vmul.f32 -1.442695, %v1123_v42 }
 0xebb   :  { %2314 = vtanh.f32 %v1196_v45  ;;  %v2143_v49 = vpop.f32.mrb[39].mxu1  ;;  %v1902_v57 = vmul.f32 -1.442695, %v1196_v45 }
 0xebc   :  { %2316 = vpow2.f32 %v1900_v56 }
 0xebd   :  { %2318 = vpow2.f32 %v1902_v57 }
 0xec4   :  { %v2313_v54 = vpop.eup %2312 }
 0xec5   :  { %v2315_v55 = vpop.eup %2314  ;;  %1133 = vrot.lane.b32.xlu0 %v2313_v54, %s2398_s3 }
 0xec6   :  { %1206 = vrot.lane.b32.xlu1 %v2315_v55, %s2398_s3  ;;  %v2317_v58 = vpop.eup %2316 }
 0xec7   :  { %v2319_v59 = vpop.eup %2318  ;;  %v1127_v60 = vadd.f32 1.0, %v2317_v58 }
 0xec8   :  { %v1200_v61 = vadd.f32 1.0, %v2319_v59 }
 0xec9   :  { %2320 = vrcp.f32 %v1127_v60 }
 0xeca   :  { %2322 = vrcp.f32 %v1200_v61 }
 0xed3   :  { %v2321_v29 = vpop.eup %2320 }
 0xed4   :  { %v2323_v0 = vpop.eup %2322  ;;  %v1131_v22 = vmul.f32 %v2321_v29, %v2718_v12 }
 0xed5   :  { %v1204_v5 = vmul.f32 %v2323_v0, %v2722_v15 }
 0xf37   :  { %v1134_v62 = vpop.permute.xlu0 %1133 }
 0xf38   :  { %v1136_v1 = vmul.f32 %v2321_v29, %v1134_v62  ;;  %v1207_v2 = vpop.permute.xlu1 %1206 }
 0xf39   :  { %v1209_v3 = vmul.f32 %v2323_v0, %v1207_v2 }
 0xf3a   :  { %1138 = vrot.lane.b32.xlu0 %v1136_v1, %s2398_s3 }
 0xf3b   :  { %1211 = vrot.lane.b32.xlu1 %v1209_v3, %s2398_s3 }
 0xfac   :  { %v1139_v4 = vpop.permute.xlu0 %1138 }
 0xfad   :  { %v2762_v6 = vadd.f32 %v1139_v4, %v1131_v22  ;;  %v1212_v7 = vpop.permute.xlu1 %1211 }
 0xfae   :  { %v2764_v32 = vadd.f32 %v1212_v7, %v1204_v5 }
 0xfaf   :  { %2324 = vtanh.f32 %v2762_v6 }
 0xfb0   :  { %2326 = vtanh.f32 %v2764_v32 }
 0xfb9   :  { %v2325_v9 = vpop.eup %2324 }
 0xfba   :  { %v2327_v11 = vpop.eup %2326  ;;  %1144 = vrot.lane.b32.xlu0 %v2325_v9, %s2398_s3 }
 0xfbb   :  { %1217 = vrot.lane.b32.xlu1 %v2327_v11, %s2398_s3  ;;  %v2368_v11 = vld [vmem:[%s2911_s2] sm:$0xff]  }
0x102c   :  { %v1145_v13 = vpop.permute.xlu0 %1144 }
0x102d   :  { %v2770_v12 = vmul.f32 %v2321_v29, %v1145_v13  ;;  %v1218_v14 = vpop.permute.xlu1 %1217 }
0x102e   :  { %v1220_v15 = vmul.f32 %v2323_v0, %v1218_v14  ;;  %v2369_v14 = vld [vmem:[%s2911_s2 + $0x8] sm:$0xff]  }
0x102f   :  { %v1222_v26 = vpack.c.bf16 %v2770_v12, %v2770_v12 }
0x1030   :  { %v1221_v17 = vpack.c.bf16 %v1220_v15, %v1220_v15 }
0x1031   :  { %1224 = vrot.lane.b32.xlu0 %v1222_v26, %s2399_s4 }
0x1032   :  { %1270 = vrot.lane.b32.xlu1 %v1221_v17, %s2399_s4 }
0x10a3   :  { %v1225_v18 = vpop.permute.xlu0 %1224 }
0x10a4   :  { %v1271_v21 = vpop.permute.xlu1 %1270  ;;  %2149 = vmatmul.mubr.msk.bf16.vlgmr.msra.gmra.mrb[32].mxu0 %vm176_vm3, %v1225_v18 }
0x10a5   :  { %2157 = vmatmul.mubr.msk.bf16.vlgmr.msra.gmra.mrb[40].mxu1 %vm176_vm3, %v1271_v21  ;;  %2161 = vmatpush3.bf16.msra.mxu0 %v2471_v8 }
0x10a6   :  { %2162 = vmatprep.subr.bf16.mxu0 %v2395_v10  ;;  %2164 = vmatprep.mubr.msk.bf16.mxu0 %vm2396_vm2, %v2395_v10 }
0x10a7   :  { %2169 = vmatpush3.bf16.msra.mxu1 %v2531_v50  ;;  %2172 = vmatprep.mubr.msk.bf16.mxu1 %vm2396_vm2, %v2395_v10 }
0x10a8   :  { %2170 = vmatprep.subr.bf16.mxu1 %v2395_v10 }
0x10a9   :  { %2163 = vmatpush3.bf16.msra.mxu0 %v2492_v16 }
0x10aa   :  { %2176 = vmatprep.subr.bf16.mxu0 %v2395_v10 }
0x10ab   :  { %2171 = vmatpush3.bf16.msra.mxu1 %v2542_v52 }
0x10ac   :  { %2165 = vmatmul.mubr.msk.bf16.vlgmr.msra.gmra.mrb[36].mxu0 %vm176_vm3, %v1271_v21  ;;  %2184 = vmatprep.subr.bf16.mxu1 %v2395_v10 }
0x10ad   :  { %2177 = vmatpush3.bf16.msra.mxu0 %v2536_v51  ;;  %2180 = vmatprep.mubr.msk.bf16.mxu0 %vm2396_vm2, %v2395_v10 }
0x10ae   :  { %2178 = vmatprep.subr.bf16.mxu0 %v2395_v10 }
0x10b1   :  { %2179 = vmatpush3.bf16.msra.mxu0 %v2548_v53 }
0x10b2   :  { %2192 = vmatprep.subr.bf16.mxu0 %v2395_v10 }
0x1177   :  { %v1263_v8 = vpop.f32.mrb[32].mxu0 }
0x1178   :  { %v1309_v16 = vpop.f32.mrb[40].mxu1  ;;  %v2150_v23 = vpop.f32.mrb[33].mxu0 }
0x1179   :  { %v1310_v24 = vadd.f32 %v1309_v16, %v1263_v8  ;;  %v2158_v27 = vpop.f32.mrb[41].mxu1  ;;  %v1266_v30 = vpop.f32.mrb[34].mxu0 }
0x117a   :  { %v1312_v31 = vpop.f32.mrb[42].mxu1  ;;  %v2151_v33 = vpop.f32.mrb[35].mxu0 }
0x117b   :  { %v1315_v34 = vadd.f32 %v2581_v63, %v1310_v24  ;;  %v2159_v35 = vpop.f32.mrb[43].mxu1 }
0x117d   :  { %2328 = vtanh.f32 %v1315_v34  ;;  %v1905_v44 = vmul.f32 -1.442695, %v1315_v34 }
0x117f   :  { %v1382_v37 = vpop.f32.mrb[36].mxu0 }
0x1180   :  { %v1388_v39 = vadd.f32 %v1382_v37, %v2509_v20  ;;  %v2166_v36 = vpop.f32.mrb[37].mxu0 }
0x1181   :  { %v1385_v40 = vpop.f32.mrb[38].mxu0 }
0x1182   :  { %2330 = vtanh.f32 %v1388_v39  ;;  %v2167_v41 = vpop.f32.mrb[39].mxu0  ;;  %v1907_v45 = vmul.f32 -1.442695, %v1388_v39 }
0x1183   :  { %2332 = vpow2.f32 %v1905_v44 }
0x1184   :  { %2334 = vpow2.f32 %v1907_v45 }
0x1187   :  { %v2329_v42 = vpop.eup %2328 }
0x1188   :  { %1325 = vrot.lane.b32.xlu0 %v2329_v42, %s2398_s3 }
0x118c   :  { %v2331_v43 = vpop.eup %2330 }
0x118d   :  { %1398 = vrot.lane.b32.xlu1 %v2331_v43, %s2398_s3  ;;  %v2333_v47 = vpop.eup %2332 }
0x118e   :  { %v1319_v48 = vadd.f32 1.0, %v2333_v47  ;;  %v2335_v49 = vpop.eup %2334 }
0x118f   :  { %v1392_v54 = vadd.f32 1.0, %v2335_v49 }
0x1190   :  { %2336 = vrcp.f32 %v1319_v48 }
0x1191   :  { %2338 = vrcp.f32 %v1392_v54 }
0x119a   :  { %v2337_v20 = vpop.eup %2336 }
0x119b   :  { %v2339_v57 = vpop.eup %2338  ;;  %v1323_v60 = vmul.f32 %v2337_v20, %v2762_v6 }
0x119c   :  { %v1396_v62 = vmul.f32 %v2339_v57, %v2764_v32 }
0x11fa   :  { %v1326_v55 = vpop.permute.xlu0 %1325 }
0x11fb   :  { %v1328_v56 = vmul.f32 %v2337_v20, %v1326_v55 }
0x11fd   :  { %1330 = vrot.lane.b32.xlu0 %v1328_v56, %s2398_s3 }
0x11ff   :  { %v1399_v58 = vpop.permute.xlu1 %1398 }
0x1200   :  { %v1401_v59 = vmul.f32 %v2339_v57, %v1399_v58 }
0x1202   :  { %1403 = vrot.lane.b32.xlu1 %v1401_v59, %s2398_s3 }
0x126f   :  { %v1331_v61 = vpop.permute.xlu0 %1330 }
0x1270   :  { %v2804_v29 = vadd.f32 %v1331_v61, %v1323_v60 }
0x1272   :  { %2340 = vtanh.f32 %v2804_v29 }
0x1274   :  { %v1404_v0 = vpop.permute.xlu1 %1403 }
0x1275   :  { %v2808_v1 = vadd.f32 %v1404_v0, %v1396_v62 }
0x1277   :  { %2342 = vtanh.f32 %v2808_v1 }
0x127c   :  { %v2341_v2 = vpop.eup %2340 }
0x127d   :  { %1336 = vrot.lane.b32.xlu0 %v2341_v2, %s2398_s3 }
0x1281   :  { %v2343_v3 = vpop.eup %2342 }
0x1282   :  { %1409 = vrot.lane.b32.xlu1 %v2343_v3, %s2398_s3 }
0x12ef   :  { %v1337_v22 = vpop.permute.xlu0 %1336 }
0x12f0   :  { %v2813_v4 = vmul.f32 %v2337_v20, %v1337_v22 }
0x12f2   :  { %v1414_v5 = vpack.c.bf16 %v2813_v4, %v2813_v4 }
0x12f4   :  { %1416 = vrot.lane.b32.xlu0 %v1414_v5, %s2399_s4  ;;  %v1410_v6 = vpop.permute.xlu1 %1409 }
0x12f5   :  { %v1412_v7 = vmul.f32 %v2339_v57, %v1410_v6 }
0x12f7   :  { %v1413_v32 = vpack.c.bf16 %v1412_v7, %v1412_v7 }
0x12f9   :  { %1462 = vrot.lane.b32.xlu1 %v1413_v32, %s2399_s4  ;;  %v2370_v32 = vld [vmem:[%s2915_s6] ss:$0 sm:$0xff] }
0x1366   :  { %v1417_v9 = vpop.permute.xlu0 %1416 }
0x1367   :  { %2173 = vmatmul.mubr.msk.bf16.vlgmr.msra.gmra.mrb[44].mxu1 %vm176_vm3, %v1417_v9 }
0x1368   :  { %2185 = vmatpush3.bf16.msra.mxu1 %v2368_v11  ;;  %2188 = vmatprep.mubr.msk.bf16.mxu1 %vm2396_vm2, %v2395_v10 }
0x1369   :  { %2186 = vmatprep.subr.bf16.mxu1 %v2395_v10 }
0x136b   :  { %v1463_v13 = vpop.permute.xlu1 %1462 }
0x136c   :  { %2187 = vmatpush3.bf16.msra.mxu1 %v2369_v14  ;;  %2181 = vmatmul.mubr.msk.bf16.vlgmr.msra.gmra.mrb[40].mxu0 %vm176_vm3, %v1463_v13 }
0x136d   :  { %2200 = vmatprep.subr.bf16.mxu1 %v2395_v10  ;;  %2193 = vmatpush3.bf16.msra.mxu0 %v2531_v50 }
0x136e   :  { %2194 = vmatprep.subr.bf16.mxu0 %v2395_v10  ;;  %2196 = vmatprep.mubr.msk.bf16.mxu0 %vm2396_vm2, %v2395_v10 }
0x136f   :  { %2189 = vmatmul.mubr.msk.bf16.vlgmr.msra.gmra.mrb[48].mxu1 %vm176_vm3, %v1463_v13 }
0x1370   :  { %2201 = vmatpush3.bf16.msra.mxu1 %v2536_v51  ;;  %2204 = vmatprep.mubr.msk.bf16.mxu1 %vm2396_vm2, %v2395_v10 }
0x1371   :  { %2202 = vmatprep.subr.bf16.mxu1 %v2395_v10  ;;  %2195 = vmatpush3.bf16.msra.mxu0 %v2542_v52 }
0x1374   :  { %2203 = vmatpush3.bf16.msra.mxu1 %v2548_v53 }
0x143a   :  { %v1455_v15 = vpop.f32.mrb[44].mxu1 }
0x143b   :  { %v2174_v50 = vpop.f32.mrb[45].mxu1 }
0x143c   :  { %v1458_v26 = vpop.f32.mrb[46].mxu1 }
0x143d   :  { %v2175_v17 = vpop.f32.mrb[47].mxu1 }
0x143f   :  { %v1501_v18 = vpop.f32.mrb[40].mxu0 }
0x1440   :  { %v1502_v21 = vadd.f32 %v1501_v18, %v1455_v15  ;;  %v2182_v8 = vpop.f32.mrb[41].mxu0 }
0x1441   :  { %v1504_v16 = vpop.f32.mrb[42].mxu0 }
0x1442   :  { %v1507_v23 = vadd.f32 %v2581_v63, %v1502_v21  ;;  %v1574_v51 = vpop.f32.mrb[48].mxu1  ;;  %v2183_v24 = vpop.f32.mrb[43].mxu0 }
0x1443   :  { %v1580_v27 = vadd.f32 %v1574_v51, %v2513_v25  ;;  %v2190_v30 = vpop.f32.mrb[49].mxu1  ;;  %v2239_v24 = vld [vmem:[%s2916_s7 + $0x8] sm:$0xff]  }
0x1444   :  { %2344 = vtanh.f32 %v1507_v23  ;;  %v1577_v10 = vpop.f32.mrb[50].mxu1  ;;  %v1910_v33 = vmul.f32 -1.442695, %v1507_v23 }
0x1445   :  { %2346 = vtanh.f32 %v1580_v27  ;;  %v2191_v52 = vpop.f32.mrb[51].mxu1  ;;  %v1912_v34 = vmul.f32 -1.442695, %v1580_v27 }
0x1446   :  { %2348 = vpow2.f32 %v1910_v33 }
0x1447   :  { %2350 = vpow2.f32 %v1912_v34 }
0x144e   :  { %v2345_v53 = vpop.eup %2344 }
0x144f   :  { %v2347_v31 = vpop.eup %2346  ;;  %1517 = vrot.lane.b32.xlu0 %v2345_v53, %s2398_s3 }
0x1450   :  { %1590 = vrot.lane.b32.xlu1 %v2347_v31, %s2398_s3  ;;  %v2349_v63 = vpop.eup %2348 }
0x1451   :  { %v2351_v35 = vpop.eup %2350  ;;  %v1511_v37 = vadd.f32 1.0, %v2349_v63 }
0x1452   :  { %v1584_v39 = vadd.f32 1.0, %v2351_v35 }
0x1453   :  { %2352 = vrcp.f32 %v1511_v37 }
0x1454   :  { %2354 = vrcp.f32 %v1584_v39 }
0x145d   :  { %v2353_v25 = vpop.eup %2352 }
0x145e   :  { %v2355_v40 = vpop.eup %2354  ;;  %v1515_v44 = vmul.f32 %v2353_v25, %v2804_v29 }
0x145f   :  { %v1588_v47 = vmul.f32 %v2355_v40, %v2808_v1 }
0x14c1   :  { %v1518_v36 = vpop.permute.xlu0 %1517 }
0x14c2   :  { %v1520_v41 = vmul.f32 %v2353_v25, %v1518_v36  ;;  %v1591_v42 = vpop.permute.xlu1 %1590 }
0x14c3   :  { %v1593_v43 = vmul.f32 %v2355_v40, %v1591_v42  ;;  %v1916_v42 = vld [vmem:[%s2917_s8] ss:$0 sm:$0xff]  ;;  %s2371_s8 = scalar_lea.vmem %s1856_s28, 1024 }
0x14c4   :  { %1522 = vrot.lane.b32.xlu0 %v1520_v41, %s2398_s3  ;;  %p2372_p0 = scmp.ne.s32.totalorder %s1856_s28, %s2371_s8  ;;  %p2377_p2 = scmp.lt.s32.totalorder %s2371_s8, %s2371_s8 }
0x14c5   :  { %1595 = vrot.lane.b32.xlu1 %v1593_v43, %s2398_s3 }
0x14c6   :  { %p2378_p3 = por %p2377_p2, %p2376_p1 }
0x14c8   :  { %p2379_p4 = pnand %p2378_p3, %p2372_p0 }
0x1536   :  { %v1523_v45 = vpop.permute.xlu0 %1522 }
0x1537   :  { %v1525_v48 = vadd.f32 %v1523_v45, %v1515_v44  ;;  %v1596_v49 = vpop.permute.xlu1 %1595 }
0x1538   :  { %v1598_v54 = vadd.f32 %v1596_v49, %v1588_v47 }
0x1539   :  { %2356 = vtanh.f32 %v1525_v48 }
0x153a   :  { %2358 = vtanh.f32 %v1598_v54 }
0x1543   :  { %v2357_v20 = vpop.eup %2356 }
0x1544   :  { %v2359_v55 = vpop.eup %2358  ;;  %1528 = vrot.lane.b32.xlu0 %v2357_v20, %s2398_s3 }
0x1545   :  { %1601 = vrot.lane.b32.xlu1 %v2359_v55, %s2398_s3 }
0x15b6   :  { %v1529_v56 = vpop.permute.xlu0 %1528 }
0x15b7   :  { %v1531_v57 = vmul.f32 %v2353_v25, %v1529_v56  ;;  %v1602_v58 = vpop.permute.xlu1 %1601 }
0x15b8   :  { %v1604_v59 = vmul.f32 %v2355_v40, %v1602_v58 }
0x15b9   :  { %v1606_v60 = vpack.c.bf16 %v1531_v57, %v1531_v57 }
0x15ba   :  { %v1605_v61 = vpack.c.bf16 %v1604_v59, %v1604_v59 }
0x15bb   :  { %1608 = vrot.lane.b32.xlu0 %v1606_v60, %s2399_s4 }
0x15bc   :  { %1654 = vrot.lane.b32.xlu1 %v1605_v61, %s2399_s4 }
0x162d   :  { %v1609_v29 = vpop.permute.xlu0 %1608 }
0x162e   :  { %v1655_v62 = vpop.permute.xlu1 %1654  ;;  %2197 = vmatmul.mubr.msk.bf16.vlgmr.msra.gmra.mrb[44].mxu0 %vm176_vm3, %v1609_v29 }
0x162f   :  { %2205 = vmatmul.mubr.msk.bf16.vlgmr.msra.gmra.mrb[52].mxu1 %vm176_vm3, %v1655_v62 }
0x1701   :  { %v1647_v0 = vpop.f32.mrb[44].mxu0 }
0x1702   :  { %v1693_v1 = vpop.f32.mrb[52].mxu1  ;;  %v2198_v2 = vpop.f32.mrb[45].mxu0 }
0x1703   :  { %v1694_v3 = vadd.f32 %v1693_v1, %v1647_v0  ;;  %v2206_v22 = vpop.f32.mrb[53].mxu1  ;;  %v1650_v5 = vpop.f32.mrb[46].mxu0 }
0x1704   :  { %v1696_v6 = vpop.f32.mrb[54].mxu1  ;;  %v2199_v7 = vpop.f32.mrb[47].mxu0 }
0x1705   :  { %v1699_v9 = vadd.f32 %v2370_v32, %v1694_v3  ;;  %v2207_v11 = vpop.f32.mrb[55].mxu1 }
0x1707   :  { %2360 = vtanh.f32 %v1699_v9  ;;  %v1915_v14 = vmul.f32 -1.442695, %v1699_v9 }
0x1709   :  { %2362 = vpow2.f32 %v1915_v14 }
0x1711   :  { %v2361_v13 = vpop.eup %2360 }
0x1712   :  { %1709 = vrot.lane.b32.xlu0 %v2361_v13, %s2398_s3 }
0x1713   :  { %v2363_v15 = vpop.eup %2362 }
0x1714   :  { %v1703_v50 = vadd.f32 1.0, %v2363_v15 }
0x1716   :  { %2364 = vrcp.f32 %v1703_v50 }
0x1720   :  { %v2365_v26 = vpop.eup %2364 }
0x1721   :  { %v1707_v21 = vmul.f32 %v2365_v26, %v1525_v48 }
0x1784   :  { %v1710_v17 = vpop.permute.xlu0 %1709 }
0x1785   :  { %v1712_v18 = vmul.f32 %v2365_v26, %v1710_v17 }
0x1787   :  { %1714 = vrot.lane.b32.xlu1 %v1712_v18, %s2398_s3 }
0x178b   :  { %382 = vrot.lane.b32.xlu1 %v2598_v46, %s2399_s4  ;;  %v2238_v46 = vld [vmem:[%s2916_s7] sm:$0xff]  }
0x178c   :  { %2208 = vmatprep.subr.bf16.mxu0 %v2238_v46 }
0x178d   :  { %2209 = vmatpush3.bf16.msra.mxu0 %v2238_v46 }
0x178e   :  { %2210 = vmatprep.subr.bf16.mxu0 %v2239_v24 }
0x178f   :  { %765 = vrot.lane.b32.xlu1 %v2684_v28, %s2399_s4 }
0x1791   :  { %2211 = vmatpush3.bf16.msra.mxu0 %v2239_v24 }
0x1793   :  { %1149 = vrot.lane.b32.xlu1 %v2770_v12, %s2399_s4 }
0x1797   :  { %1533 = vrot.lane.b32.xlu1 %v1531_v57, %s2399_s4 }
0x17f9   :  { %v1715_v8 = vpop.permute.xlu1 %1714 }
0x17fa   :  { %v1717_v16 = vadd.f32 %v1715_v8, %v1707_v21 }
0x17fc   :  { %2366 = vtanh.f32 %v1717_v16 }
0x17fd   :  { %v383_v23 = vpop.permute.xlu1 %382 }
0x17fe   :  { %385 = vst.msk [vmem:[#allocation3] sm:$0xff] %vm176_vm3, %v383_v23 }
0x1801   :  { %v766_v51 = vpop.permute.xlu1 %765 }
0x1802   :  { %769 = vst.msk [vmem:[#allocation3 + $0x10] sm:$0xff] %vm176_vm3, %v766_v51 }
0x1805   :  { %v1150_v28 = vpop.permute.xlu1 %1149  ;;  %v1730_v33 = vld [vmem:[#allocation3] sm:$0xff] }
0x1806   :  { %v2367_v12 = vpop.eup %2366  ;;  %1153 = vst.msk [vmem:[#allocation3 + $0x20] sm:$0xff] %vm176_vm3, %v1150_v28 }
0x1807   :  { %1720 = vrot.lane.b32.xlu0 %v2367_v12, %s2398_s3 }
0x1809   :  { %v1534_v27 = vpop.permute.xlu1 %1533 }
0x180a   :  { %1537 = vst.msk [vmem:[#allocation3 + $0x30] sm:$0xff] %vm176_vm3, %v1534_v27 }
0x180b   :  { %573 = vrot.lane.b32.xlu0 %v2641_v38, %s2399_s4 }
0x180d   :  { %v1734_v35 = vld [vmem:[#allocation3 + $0x20] sm:$0xff] }
0x180f   :  { %957 = vrot.lane.b32.xlu0 %v2727_v19, %s2399_s4  ;;  %v1732_v19 = vld [vmem:[#allocation3 + $0x10] sm:$0xff] }
0x1811   :  { %v1736_v36 = vld [vmem:[#allocation3 + $0x30] sm:$0xff] }
0x1813   :  { %1341 = vrot.lane.b32.xlu0 %v2813_v4, %s2399_s4 }
0x1879   :  { %v1721_v30 = vpop.permute.xlu0 %1720 }
0x187a   :  { %v1723_v10 = vmul.f32 %v2365_v26, %v1721_v30 }
0x187c   :  { %1725 = vrot.lane.b32.xlu0 %v1723_v10, %s2399_s4 }
0x187d   :  { %v574_v52 = vpop.permute.xlu0 %573 }
0x187e   :  { %577 = vst.msk [vmem:[#allocation3 + $0x8] sm:$0xff] %vm176_vm3, %v574_v52 }
0x1881   :  { %v958_v53 = vpop.permute.xlu0 %957 }
0x1882   :  { %961 = vst.msk [vmem:[#allocation3 + $0x18] sm:$0xff] %vm176_vm3, %v958_v53 }
0x1885   :  { %v1342_v31 = vpop.permute.xlu0 %1341  ;;  %v1731_v34 = vld [vmem:[#allocation3 + $0x8] sm:$0xff] }
0x1886   :  { %1345 = vst.msk [vmem:[#allocation3 + $0x28] sm:$0xff] %vm176_vm3, %v1342_v31  ;;  %v1738_v38 = vpack.c.bf16 %v1731_v34, %v1730_v33 }
0x1888   :  { %2212 = vmatprep.mubr.msk.bf16.mxu0 %vm176_vm3, %v1738_v38 }
0x1889   :  { %v1733_v4 = vld [vmem:[#allocation3 + $0x18] sm:$0xff] }
0x188a   :  { %v1739_v63 = vpack.c.bf16 %v1733_v4, %v1732_v19 }
0x188c   :  { %2213 = vmatmul.mubr.msk.bf16.vlgmr.msra.gmra.mrb[48].mxu0 %vm176_vm3, %v1739_v63 }
0x188d   :  { %v1735_v37 = vld [vmem:[#allocation3 + $0x28] sm:$0xff] }
0x188e   :  { %v1740_v39 = vpack.c.bf16 %v1735_v37, %v1734_v35 }
0x1890   :  { %2216 = vmatprep.mubr.msk.bf16.mxu0 %vm176_vm3, %v1740_v39 }
0x18ee   :  { %v1726_v25 = vpop.permute.xlu0 %1725 }
0x18ef   :  { %1729 = vst.msk [vmem:[#allocation3 + $0x38] sm:$0xff] %vm176_vm3, %v1726_v25 }
0x18f6   :  { %v1737_v40 = vld [vmem:[#allocation3 + $0x38] sm:$0xff] }
0x18f7   :  { %v1741_v41 = vpack.c.bf16 %v1737_v40, %v1736_v36 }
0x18f9   :  { %2217 = vmatmul.mubr.msk.bf16.gmra.mrb[52].mxu0 %vm176_vm3, %v1741_v41 }
0x195f   :  { %v2214_v43 = vpop.f32.mrb[48].mxu0 }
0x1960   :  { %v1820_v44 = vadd.f32 %v2214_v43, %v1916_v42  ;;  %v1811_v45 = vpop.f32.mrb[49].mxu0 }
0x1961   :  { %v1812_v47 = vadd.f32 %v1916_v42, %v1811_v45  ;;  %v2215_v48 = vpop.f32.mrb[50].mxu0 }
0x1962   :  { %1844 = vst [vmem:[#allocation4 + $0x10] sm:$0xff] %v1820_v44  ;;  %v1823_v49 = vadd.f32 %v2215_v48, %v1916_v42  ;;  %v1814_v54 = vpop.f32.mrb[51].mxu0 }
0x1963   :  { %1842 = vst [vmem:[#allocation4] sm:$0xff] %v1812_v47  ;;  %v1815_v20 = vadd.f32 %v1916_v42, %v1814_v54 }
0x1964   :  { %1845 = vst [vmem:[#allocation4 + $0x18] sm:$0xff] %v1823_v49 }
0x1965   :  { %1843 = vst [vmem:[#allocation4 + $0x8] sm:$0xff] %v1815_v20 }
0x19cc   :  { %v2218_v55 = vpop.f32.mrb[52].mxu0 }
0x19cd   :  { %v1836_v56 = vadd.f32 %v2218_v55, %v1916_v42  ;;  %v1827_v57 = vpop.f32.mrb[53].mxu0 }
0x19ce   :  { %v1828_v58 = vadd.f32 %v1916_v42, %v1827_v57  ;;  %v2219_v59 = vpop.f32.mrb[54].mxu0 }
0x19cf   :  { %1848 = vst [vmem:[#allocation4 + $0x30] sm:$0xff] %v1836_v56  ;;  %v1839_v60 = vadd.f32 %v2219_v59, %v1916_v42  ;;  %v1830_v61 = vpop.f32.mrb[55].mxu0 }
0x19d0   :  { %1846 = vst [vmem:[#allocation4 + $0x20] sm:$0xff] %v1828_v58  ;;  %v1831_v29 = vadd.f32 %v1916_v42, %v1830_v61 }
0x19d1   :  { %1849 = vst [vmem:[#allocation4 + $0x38] sm:$0xff] %v1839_v60 }
0x19d2   :  { %1847 = vst [vmem:[#allocation4 + $0x28] sm:$0xff] %v1831_v29 }
0x19d3   :  { %2382 = shalt.err (!%p2379_p4)
}
0x19d4   :  { %s2383_s30 = scalar_lea.hbm %s2918_s9, 1024 }
0x19d5   :  { %p2384_p5 = scmp.ne.s32.totalorder %s2918_s9, %s2383_s30  ;;  %p2387_p6 = scmp.lt.u32.totalorder %s2383_s30, %s2918_s9 }
0x19d7   :  { %p2389_p7 = pnand %p2387_p6, %p2384_p5 }
0x19d9   :  { %2392 = shalt.err (!%p2389_p7)
}
0x19da   :  { %s2401_s13 = smov 128   ;;  %s2402_s14 = smov 8  }
0x19db   :  { %1861 = dma.vmem_to_hbm [thread:$0]  %s1856_s28, 1024, %s2918_s9, [#allocation5], %s2401_s13, %s2401_s13, %s2402_s14  }
0x19dc   :  { %2393 = dma.done.wait [#allocation5], 1024  }
0x19dd   :  { %2394 = vsyncadd [#allocation5], 4294966272 }
0x19de   :  { %1865 = vsyncpa [#allocation5], 1 }

</bundles_post_ra>
